<compile_context>
chip_gen: v7x
topology: tpu7x:2x2x1
jax: 0.10.0
libtpu: 0.0.40
codegen_flags: <defaults>
</compile_context>

<pallas_src>
import functools

import jax
import jax.numpy as jnp
import numpy as np
from jax.experimental import pallas as pl
from jax.experimental.pallas import tpu as pltpu

GCN_DIM = 100       # GCN output dim from the PyTorch module
GCN_PAD = 128       # padded (lane-dense) GCN dim
ANCHOR_DIM = 20     # anchorLinear output dim
FLAT_DIM = 400      # node_num * ANCHOR_DIM (linear1 input)
FLAT_PAD = 512      # padded (lane-dense) flattened dim


# ---------------------------------------------------------------------------
# Fused kernel: single invocation, all operands as full VMEM blocks.
# ---------------------------------------------------------------------------
def _disc_kernel(x_ref, filt_ref,
                 g1w_ref, g1b_ref, g2w_ref, g2b_ref,
                 wa_ref, ba_ref,
                 w1_ref, b1_ref, w2_ref, b2_ref,
                 w3_ref, b3_ref, w4_ref, b4_ref,
                 flat_ref, o_ref, *, batch, num_filters, node_num):
    nf = num_filters
    bn = batch * node_num

    def elu(v):
        # exp only on the non-positive branch to avoid overflow for large positives
        return jnp.where(v > 0, v, jnp.exp(jnp.minimum(v, 0.0)) - 1.0)

    def leaky(v):
        return jnp.where(v >= 0, v, 0.01 * v)

    def f32dot(a, b):
        return jnp.dot(a, b, preferred_element_type=jnp.float32)

    def gcn(h, w_ref, b_ref):
        # One MXU push for the (batched, block-diagonal) bmm: (nf*B*N, B*N) @ (B*N, C).
        conv = f32dot(filt_ref[...], h)                          # (nf*bn, C)
        # Lane-concat the per-filter blocks -> one weight matmul with K = nf*C
        # (K = 256 for the padded hidden layer: fills the 256-deep MXU on v6e/v7x).
        cat = jnp.concatenate([conv[f * bn:(f + 1) * bn, :] for f in range(nf)],
                              axis=1)                            # (bn, nf*C)
        # PyTorch: conv_out += conv_out + bias  ==  2*conv_out + bias
        return elu(2.0 * f32dot(cat, w_ref[...]) + b_ref[...])

    h1 = gcn(x_ref[...], g1w_ref, g1b_ref)                       # (bn, 128)
    # TODO(synk): Dropout(p=0.1) treated as identity (eval mode); training-mode dropout not implemented.
    h2 = gcn(h1, g2w_ref, g2b_ref)                               # (bn, 128)

    anchor = f32dot(h2, wa_ref[...]) + ba_ref[...]               # (bn, 20)

    # torch.flatten(start_dim=1): scatter matmul + mask + segment-sum matmul.
    # All index masks generated in-kernel from iotas (no DMA'd constants).
    def iota2(shape, dim):
        return jax.lax.broadcasted_iota(jnp.int32, shape, dim).astype(jnp.float32)

    ad = float(ANCHOR_DIM)
    nn_ = float(node_num)
    fd = float(FLAT_DIM)

    # gp[a, m] = 1 iff (m % 20 == a) and m < 400            -> spread[r, m] = anchor[r, m % 20]
    col_a = iota2((ANCHOR_DIM, FLAT_PAD), 1)
    row_a = iota2((ANCHOR_DIM, FLAT_PAD), 0)
    a_of_col = col_a - jnp.floor(col_a / ad) * ad
    gp = jnp.where((a_of_col == row_a) & (col_a < fd), 1.0, 0.0)           # (20, 512)

    # gm[r, m] = 1 iff (r % N == m // 20) and m < 400       -> picks the right node per column
    col_m = iota2((bn, FLAT_PAD), 1)
    row_m = iota2((bn, FLAT_PAD), 0)
    node_of_col = jnp.floor(col_m / ad)
    node_of_row = row_m - jnp.floor(row_m / nn_) * nn_
    gm = jnp.where((node_of_row == node_of_col) & (col_m < fd), 1.0, 0.0)  # (bn, 512)

    # sel[b, r] = 1 iff r // N == b                         -> per-batch segment sum
    col_s = iota2((batch, bn), 1)
    row_s = iota2((batch, bn), 0)
    sel = jnp.where(jnp.floor(col_s / nn_) == row_s, 1.0, 0.0)             # (B, bn)

    spread = f32dot(anchor, gp)                                  # (bn, 512)
    flat = f32dot(sel, spread * gm)                              # (B, 512)
    flat_ref[...] = flat                                         # one lane-dense store

    # Fused MLP head on all batches at once (lane-dense (B, 512) operand).
    o1 = leaky(f32dot(flat, w1_ref[...]) + b1_ref[...])
    o2 = leaky(f32dot(o1, w2_ref[...]) + b2_ref[...])
    o3 = leaky(f32dot(o2, w3_ref[...]) + b3_ref[...])
    o4 = f32dot(o3, w4_ref[...]) + b4_ref[...]
    # Numerically-stable sigmoid (no inf intermediate for very negative logits).
    z = jnp.exp(-jnp.abs(o4))
    o_ref[...] = jnp.where(o4 >= 0, 1.0 / (1.0 + z), z / (1.0 + z))


# ---------------------------------------------------------------------------
# Wrapper: pad/reshape weights to lane-dense layouts and call the fused kernel.
# ---------------------------------------------------------------------------
def _full_spec(arr):
    nd = arr.ndim
    return pl.BlockSpec(arr.shape, lambda i, nd=nd: (0,) * nd)


def _pad_to(a, axis, size):
    pad = [(0, 0)] * a.ndim
    pad[axis] = (0, size - a.shape[axis])
    return jnp.pad(a, pad)


@functools.partial(jax.jit, static_argnames=("num_filters",))
def discriminator_forward(x, graph_conv_filters, params, *, num_filters):
    B, N, F = x.shape
    nf = num_filters
    assert graph_conv_filters.shape[-2] // graph_conv_filters.shape[-1] == nf
    assert N * ANCHOR_DIM == FLAT_DIM, "module requires node_num * 20 == 400 (linear1)"
    BN = B * N

    # Batch fold: x -> (B*N, F); graph filter -> (filter, batch, node)-ordered block-diag (nf*B*N, B*N).
    x_big = x.reshape(BN, F).astype(jnp.float32)
    gf = graph_conv_filters.reshape(B, nf, N, N).astype(jnp.float32)   # [b, f, m, n]
    gf = jnp.transpose(gf, (1, 0, 2, 3))                               # [f, b, m, n]
    eye_b = jnp.eye(B, dtype=jnp.float32)
    filt_big = jnp.einsum("fbmn,bc->fbmcn", gf, eye_b).reshape(nf * BN, BN)

    # GCN weights: layer-1 kept (nf*F, 100)->pad 128; layer-2 vstacked per-filter to (nf*128, 128)
    # so the in-kernel lane-concat of conv blocks gives a single K=nf*128 matmul.
    g1w = _pad_to(params["g1w"], 1, GCN_PAD)                                           # (nf*F, 128)
    g1b = _pad_to(params["g1b"].reshape(1, GCN_DIM), 1, GCN_PAD)                       # (1, 128)
    g2w = params["g2w"].reshape(nf, GCN_DIM, GCN_DIM)
    g2w = _pad_to(_pad_to(g2w, 1, GCN_PAD), 2, GCN_PAD).reshape(nf * GCN_PAD, GCN_PAD)  # (nf*128, 128)
    g2b = _pad_to(params["g2b"].reshape(1, GCN_DIM), 1, GCN_PAD)                       # (1, 128)
    wa = _pad_to(params["wa"], 0, GCN_PAD)                                             # (128, 20)
    ba = params["ba"].reshape(1, ANCHOR_DIM)                                           # (1, 20)
    w1 = _pad_to(params["w1"], 0, FLAT_PAD)                                            # (512, 256)
    b1 = params["b1"].reshape(1, -1)
    w2, b2 = params["w2"], params["b2"].reshape(1, -1)
    w3, b3 = params["w3"], params["b3"].reshape(1, -1)
    w4, b4 = params["w4"], params["b4"].reshape(1, -1)

    inputs = (x_big, filt_big, g1w, g1b, g2w, g2b, wa, ba,
              w1, b1, w2, b2, w3, b3, w4, b4)

    kern = functools.partial(_disc_kernel, batch=B, num_filters=nf, node_num=N)

    flat, o = pl.pallas_call(
        kern,
        out_shape=(jax.ShapeDtypeStruct((B, FLAT_PAD), jnp.float32),
                   jax.ShapeDtypeStruct((B, 1), jnp.float32)),
        grid_spec=pltpu.PrefetchScalarGridSpec(
            num_scalar_prefetch=0,
            grid=(1,),
            in_specs=[_full_spec(a) for a in inputs],
            out_specs=[pl.BlockSpec((B, FLAT_PAD), lambda i: (0, 0)),
                       pl.BlockSpec((B, 1), lambda i: (0, 0))],
        ),
        compiler_params=pltpu.CompilerParams(
            dimension_semantics=("arbitrary",),
            vmem_limit_bytes=32 * 1024 * 1024,   # explicit headroom; working set is ~2 MiB
        ),
    )(*inputs)

    anchor = flat[:, :FLAT_DIM].reshape(B, N, ANCHOR_DIM)
    return anchor, o


# ---------------------------------------------------------------------------
# Parameter construction (deterministic, synthetic) and pure-JAX reference.
# ---------------------------------------------------------------------------
def xavier_uniform(key, shape):
    fan_in, fan_out = shape
    bound = float(np.sqrt(6.0 / (fan_in + fan_out)))
    return jax.random.uniform(key, shape, jnp.float32, -bound, bound)


def make_params(key, attr_dim, num_filters):
    ks = jax.random.split(key, 12)
    p = {}
    p["g1w"] = xavier_uniform(ks[0], (attr_dim * num_filters, GCN_DIM))
    p["g1b"] = jnp.zeros((GCN_DIM,), jnp.float32)
    p["g2w"] = xavier_uniform(ks[1], (GCN_DIM * num_filters, GCN_DIM))
    p["g2b"] = jnp.zeros((GCN_DIM,), jnp.float32)

    def linear(kw, kb, fin, fout):
        bound = 1.0 / float(np.sqrt(fin))
        w = jax.random.uniform(kw, (fin, fout), jnp.float32, -bound, bound)
        b = jax.random.uniform(kb, (fout,), jnp.float32, -bound, bound)
        return w, b

    p["wa"], p["ba"] = linear(ks[2], ks[3], GCN_DIM, ANCHOR_DIM)
    p["w1"], p["b1"] = linear(ks[4], ks[5], FLAT_DIM, 256)
    p["w2"], p["b2"] = linear(ks[6], ks[7], 256, 64)
    p["w3"], p["b3"] = linear(ks[8], ks[9], 64, 32)
    p["w4"], p["b4"] = linear(ks[10], ks[11], 32, 1)
    return p


def _elu(v):
    return jnp.where(v > 0, v, jnp.exp(jnp.minimum(v, 0.0)) - 1.0)


def _leaky(v):
    return jnp.where(v >= 0, v, 0.01 * v)


def gcn_ref(x, filters, w, b, nf):
    conv = jnp.einsum("bmn,bnf->bmf", filters, x)
    N = x.shape[1]
    reorg = jnp.concatenate([conv[:, f * N:(f + 1) * N, :] for f in range(nf)], axis=2)
    return _elu(2.0 * (reorg @ w) + b)


def discriminator_ref(x, filters, p, nf):
    h = gcn_ref(x, filters, p["g1w"], p["g1b"], nf)
    h = gcn_ref(h, filters, p["g2w"], p["g2b"], nf)
    anchor = h @ p["wa"] + p["ba"]
    o = anchor.reshape(x.shape[0], -1)
    o = _leaky(o @ p["w1"] + p["b1"])
    o = _leaky(o @ p["w2"] + p["b2"])
    o = _leaky(o @ p["w3"] + p["b3"])
    o = o @ p["w4"] + p["b4"]
    o = jax.nn.sigmoid(o)
    return anchor, o


if __name__ == "__main__":
    B = 2
    node_num = FLAT_DIM // ANCHOR_DIM      # = 20, fixed by anchorLinear(100,20) + linear1(400,256)
    attr_dim = 8
    num_filters = 2

    key = jax.random.PRNGKey(0)
    k_x, k_f, k_p = jax.random.split(key, 3)
    x = jax.random.normal(k_x, (B, node_num, attr_dim), jnp.float32)
    graph_conv_filters = jax.random.normal(
        k_f, (B, num_filters * node_num, node_num), jnp.float32)
    params = make_params(k_p, attr_dim, num_filters)

    anchor, o = discriminator_forward(x, graph_conv_filters, params,
                                      num_filters=num_filters)
    jax.block_until_ready((anchor, o))

    anchor_r, o_r = discriminator_ref(x, graph_conv_filters, params, num_filters)
    np.testing.assert_allclose(np.asarray(anchor), np.asarray(anchor_r), rtol=1e-3, atol=1e-3)
    np.testing.assert_allclose(np.asarray(o), np.asarray(o_r), rtol=1e-3, atol=1e-3)

    print("KERNEL_OK")
</pallas_src>

<mosaic_0001>
module attributes {stable_mosaic.version = 11 : i64} {
  func.func @_disc_kernel(%arg0: i32, %arg1: memref<40x8xf32, #tpu.memory_space<vmem>>, %arg2: memref<80x40xf32, #tpu.memory_space<vmem>>, %arg3: memref<16x128xf32, #tpu.memory_space<vmem>>, %arg4: memref<1x128xf32, #tpu.memory_space<vmem>>, %arg5: memref<256x128xf32, #tpu.memory_space<vmem>>, %arg6: memref<1x128xf32, #tpu.memory_space<vmem>>, %arg7: memref<128x20xf32, #tpu.memory_space<vmem>>, %arg8: memref<1x20xf32, #tpu.memory_space<vmem>>, %arg9: memref<512x256xf32, #tpu.memory_space<vmem>>, %arg10: memref<1x256xf32, #tpu.memory_space<vmem>>, %arg11: memref<256x64xf32, #tpu.memory_space<vmem>>, %arg12: memref<1x64xf32, #tpu.memory_space<vmem>>, %arg13: memref<64x32xf32, #tpu.memory_space<vmem>>, %arg14: memref<1x32xf32, #tpu.memory_space<vmem>>, %arg15: memref<32x1xf32, #tpu.memory_space<vmem>>, %arg16: memref<1x1xf32, #tpu.memory_space<vmem>>, %arg17: memref<2x512xf32, #tpu.memory_space<vmem>>, %arg18: memref<2x1xf32, #tpu.memory_space<vmem>>) attributes {dimension_semantics = [#tpu.dimension_semantics<arbitrary>], iteration_bounds = array<i64: 1>, scalar_prefetch = 0 : i64, scratch_operands = 0 : i64, tpu.core_type = #tpu.core_type<tc>, window_params = [{pipeline_mode = #tpu.pipeline_mode<synchronous>, transform_indices = @transform_0, window_bounds = array<i64: 40, 8>}, {pipeline_mode = #tpu.pipeline_mode<synchronous>, transform_indices = @transform_1, window_bounds = array<i64: 80, 40>}, {pipeline_mode = #tpu.pipeline_mode<synchronous>, transform_indices = @transform_2, window_bounds = array<i64: 16, 128>}, {pipeline_mode = #tpu.pipeline_mode<synchronous>, transform_indices = @transform_3, window_bounds = array<i64: 1, 128>}, {pipeline_mode = #tpu.pipeline_mode<synchronous>, transform_indices = @transform_4, window_bounds = array<i64: 256, 128>}, {pipeline_mode = #tpu.pipeline_mode<synchronous>, transform_indices = @transform_5, window_bounds = array<i64: 1, 128>}, {pipeline_mode = #tpu.pipeline_mode<synchronous>, transform_indices = @transform_6, window_bounds = array<i64: 128, 20>}, {pipeline_mode = #tpu.pipeline_mode<synchronous>, transform_indices = @transform_7, window_bounds = array<i64: 1, 20>}, {pipeline_mode = #tpu.pipeline_mode<synchronous>, transform_indices = @transform_8, window_bounds = array<i64: 512, 256>}, {pipeline_mode = #tpu.pipeline_mode<synchronous>, transform_indices = @transform_9, window_bounds = array<i64: 1, 256>}, {pipeline_mode = #tpu.pipeline_mode<synchronous>, transform_indices = @transform_10, window_bounds = array<i64: 256, 64>}, {pipeline_mode = #tpu.pipeline_mode<synchronous>, transform_indices = @transform_11, window_bounds = array<i64: 1, 64>}, {pipeline_mode = #tpu.pipeline_mode<synchronous>, transform_indices = @transform_12, window_bounds = array<i64: 64, 32>}, {pipeline_mode = #tpu.pipeline_mode<synchronous>, transform_indices = @transform_13, window_bounds = array<i64: 1, 32>}, {pipeline_mode = #tpu.pipeline_mode<synchronous>, transform_indices = @transform_14, window_bounds = array<i64: 32, 1>}, {pipeline_mode = #tpu.pipeline_mode<synchronous>, transform_indices = @transform_15, window_bounds = array<i64: 1, 1>}, {pipeline_mode = #tpu.pipeline_mode<synchronous>, transform_indices = @transform_16, window_bounds = array<i64: 2, 512>}, {pipeline_mode = #tpu.pipeline_mode<synchronous>, transform_indices = @transform_17, window_bounds = array<i64: 2, 1>}]} {
    %c0 = arith.constant 0 : index
    %c0_0 = arith.constant 0 : index
    %0 = vector.load %arg1[%c0, %c0_0] : memref<40x8xf32, #tpu.memory_space<vmem>>, vector<40x8xf32>
    %c0_1 = arith.constant 0 : index
    %c0_2 = arith.constant 0 : index
    %1 = vector.load %arg2[%c0_1, %c0_2] : memref<80x40xf32, #tpu.memory_space<vmem>>, vector<80x40xf32>
    %cst = arith.constant dense<0.000000e+00> : vector<80x8xf32>
    %2 = tpu.matmul %1, %0, %cst {dimension_numbers = #tpu.dot_dimension_numbers<[1], [0], [0], [1], [0, 0, 1, 1], [], []>} : vector<80x40xf32>, vector<40x8xf32>, vector<80x8xf32> -> vector<80x8xf32>
    %3 = vector.extract_strided_slice %2 {offsets = [0, 0], sizes = [40, 8], strides = [1, 1]} : vector<80x8xf32> to vector<40x8xf32>
    %4 = vector.extract_strided_slice %2 {offsets = [40, 0], sizes = [40, 8], strides = [1, 1]} : vector<80x8xf32> to vector<40x8xf32>
    %5 = tpu.concatenate %3, %4 in 1 : vector<40x8xf32>, vector<40x8xf32> -> vector<40x16xf32>
    %c0_3 = arith.constant 0 : index
    %c0_4 = arith.constant 0 : index
    %6 = vector.load %arg3[%c0_3, %c0_4] : memref<16x128xf32, #tpu.memory_space<vmem>>, vector<16x128xf32>
    %cst_5 = arith.constant dense<0.000000e+00> : vector<40x128xf32>
    %7 = tpu.matmul %5, %6, %cst_5 {dimension_numbers = #tpu.dot_dimension_numbers<[1], [0], [0], [1], [0, 0, 1, 1], [], []>} : vector<40x16xf32>, vector<16x128xf32>, vector<40x128xf32> -> vector<40x128xf32>
    %cst_6 = arith.constant 2.000000e+00 : f32
    %8 = vector.broadcast %cst_6 : f32 to vector<40x128xf32>
    %9 = arith.mulf %8, %7 : vector<40x128xf32>
    %c0_7 = arith.constant 0 : index
    %c0_8 = arith.constant 0 : index
    %10 = vector.load %arg4[%c0_7, %c0_8] : memref<1x128xf32, #tpu.memory_space<vmem>>, vector<1x128xf32>
    %11 = vector.broadcast %10 : vector<1x128xf32> to vector<40x128xf32>
    %12 = arith.addf %9, %11 : vector<40x128xf32>
    %cst_9 = arith.constant 0.000000e+00 : f32
    %13 = vector.broadcast %cst_9 : f32 to vector<40x128xf32>
    %14 = arith.cmpf ogt, %12, %13 : vector<40x128xf32>
    %cst_10 = arith.constant 0.000000e+00 : f32
    %15 = vector.broadcast %cst_10 : f32 to vector<40x128xf32>
    %16 = arith.minimumf %12, %15 : vector<40x128xf32>
    %17 = math.exp %16 : vector<40x128xf32>
    %cst_11 = arith.constant 1.000000e+00 : f32
    %18 = vector.broadcast %cst_11 : f32 to vector<40x128xf32>
    %19 = arith.subf %17, %18 : vector<40x128xf32>
    %20 = arith.select %14, %12, %19 : vector<40x128xi1>, vector<40x128xf32>
    %c0_12 = arith.constant 0 : index
    %c0_13 = arith.constant 0 : index
    %21 = vector.load %arg2[%c0_12, %c0_13] : memref<80x40xf32, #tpu.memory_space<vmem>>, vector<80x40xf32>
    %cst_14 = arith.constant dense<0.000000e+00> : vector<80x128xf32>
    %22 = tpu.matmul %21, %20, %cst_14 {dimension_numbers = #tpu.dot_dimension_numbers<[1], [0], [0], [1], [0, 0, 1, 1], [], []>} : vector<80x40xf32>, vector<40x128xf32>, vector<80x128xf32> -> vector<80x128xf32>
    %23 = vector.extract_strided_slice %22 {offsets = [0, 0], sizes = [40, 128], strides = [1, 1]} : vector<80x128xf32> to vector<40x128xf32>
    %24 = vector.extract_strided_slice %22 {offsets = [40, 0], sizes = [40, 128], strides = [1, 1]} : vector<80x128xf32> to vector<40x128xf32>
    %25 = tpu.concatenate %23, %24 in 1 : vector<40x128xf32>, vector<40x128xf32> -> vector<40x256xf32>
    %c0_15 = arith.constant 0 : index
    %c0_16 = arith.constant 0 : index
    %26 = vector.load %arg5[%c0_15, %c0_16] : memref<256x128xf32, #tpu.memory_space<vmem>>, vector<256x128xf32>
    %cst_17 = arith.constant dense<0.000000e+00> : vector<40x128xf32>
    %27 = tpu.matmul %25, %26, %cst_17 {dimension_numbers = #tpu.dot_dimension_numbers<[1], [0], [0], [1], [0, 0, 1, 1], [], []>} : vector<40x256xf32>, vector<256x128xf32>, vector<40x128xf32> -> vector<40x128xf32>
    %cst_18 = arith.constant 2.000000e+00 : f32
    %28 = vector.broadcast %cst_18 : f32 to vector<40x128xf32>
    %29 = arith.mulf %28, %27 : vector<40x128xf32>
    %c0_19 = arith.constant 0 : index
    %c0_20 = arith.constant 0 : index
    %30 = vector.load %arg6[%c0_19, %c0_20] : memref<1x128xf32, #tpu.memory_space<vmem>>, vector<1x128xf32>
    %31 = vector.broadcast %30 : vector<1x128xf32> to vector<40x128xf32>
    %32 = arith.addf %29, %31 : vector<40x128xf32>
    %cst_21 = arith.constant 0.000000e+00 : f32
    %33 = vector.broadcast %cst_21 : f32 to vector<40x128xf32>
    %34 = arith.cmpf ogt, %32, %33 : vector<40x128xf32>
    %cst_22 = arith.constant 0.000000e+00 : f32
    %35 = vector.broadcast %cst_22 : f32 to vector<40x128xf32>
    %36 = arith.minimumf %32, %35 : vector<40x128xf32>
    %37 = math.exp %36 : vector<40x128xf32>
    %cst_23 = arith.constant 1.000000e+00 : f32
    %38 = vector.broadcast %cst_23 : f32 to vector<40x128xf32>
    %39 = arith.subf %37, %38 : vector<40x128xf32>
    %40 = arith.select %34, %32, %39 : vector<40x128xi1>, vector<40x128xf32>
    %c0_24 = arith.constant 0 : index
    %c0_25 = arith.constant 0 : index
    %41 = vector.load %arg7[%c0_24, %c0_25] : memref<128x20xf32, #tpu.memory_space<vmem>>, vector<128x20xf32>
    %cst_26 = arith.constant dense<0.000000e+00> : vector<40x20xf32>
    %42 = tpu.matmul %40, %41, %cst_26 {dimension_numbers = #tpu.dot_dimension_numbers<[1], [0], [0], [1], [0, 0, 1, 1], [], []>} : vector<40x128xf32>, vector<128x20xf32>, vector<40x20xf32> -> vector<40x20xf32>
    %c0_27 = arith.constant 0 : index
    %c0_28 = arith.constant 0 : index
    %43 = vector.load %arg8[%c0_27, %c0_28] : memref<1x20xf32, #tpu.memory_space<vmem>>, vector<1x20xf32>
    %44 = vector.broadcast %43 : vector<1x20xf32> to vector<40x20xf32>
    %45 = arith.addf %42, %44 : vector<40x20xf32>
    %46 = tpu.iota {dimensions = array<i32: 1>} : vector<20x512xi32>
    %47 = arith.sitofp %46 : vector<20x512xi32> to vector<20x512xf32>
    %48 = tpu.iota {dimensions = array<i32: 0>} : vector<20x512xi32>
    %49 = arith.sitofp %48 : vector<20x512xi32> to vector<20x512xf32>
    %cst_29 = arith.constant 2.000000e+01 : f32
    %50 = vector.broadcast %cst_29 : f32 to vector<20x512xf32>
    %51 = arith.divf %47, %50 : vector<20x512xf32>
    %52 = math.floor %51 : vector<20x512xf32>
    %cst_30 = arith.constant 2.000000e+01 : f32
    %53 = vector.broadcast %cst_30 : f32 to vector<20x512xf32>
    %54 = arith.mulf %52, %53 : vector<20x512xf32>
    %55 = arith.subf %47, %54 : vector<20x512xf32>
    %56 = arith.cmpf oeq, %55, %49 : vector<20x512xf32>
    %cst_31 = arith.constant 4.000000e+02 : f32
    %57 = vector.broadcast %cst_31 : f32 to vector<20x512xf32>
    %58 = arith.cmpf olt, %47, %57 : vector<20x512xf32>
    %59 = arith.andi %56, %58 : vector<20x512xi1>
    %cst_32 = arith.constant 1.000000e+00 : f32
    %cst_33 = arith.constant 0.000000e+00 : f32
    %60 = vector.broadcast %cst_32 : f32 to vector<20x512xf32>
    %61 = vector.broadcast %cst_33 : f32 to vector<20x512xf32>
    %62 = arith.select %59, %60, %61 : vector<20x512xi1>, vector<20x512xf32>
    %63 = tpu.iota {dimensions = array<i32: 1>} : vector<40x512xi32>
    %64 = arith.sitofp %63 : vector<40x512xi32> to vector<40x512xf32>
    %65 = tpu.iota {dimensions = array<i32: 0>} : vector<40x512xi32>
    %66 = arith.sitofp %65 : vector<40x512xi32> to vector<40x512xf32>
    %cst_34 = arith.constant 2.000000e+01 : f32
    %67 = vector.broadcast %cst_34 : f32 to vector<40x512xf32>
    %68 = arith.divf %64, %67 : vector<40x512xf32>
    %69 = math.floor %68 : vector<40x512xf32>
    %cst_35 = arith.constant 2.000000e+01 : f32
    %70 = vector.broadcast %cst_35 : f32 to vector<40x512xf32>
    %71 = arith.divf %66, %70 : vector<40x512xf32>
    %72 = math.floor %71 : vector<40x512xf32>
    %cst_36 = arith.constant 2.000000e+01 : f32
    %73 = vector.broadcast %cst_36 : f32 to vector<40x512xf32>
    %74 = arith.mulf %72, %73 : vector<40x512xf32>
    %75 = arith.subf %66, %74 : vector<40x512xf32>
    %76 = arith.cmpf oeq, %75, %69 : vector<40x512xf32>
    %cst_37 = arith.constant 4.000000e+02 : f32
    %77 = vector.broadcast %cst_37 : f32 to vector<40x512xf32>
    %78 = arith.cmpf olt, %64, %77 : vector<40x512xf32>
    %79 = arith.andi %76, %78 : vector<40x512xi1>
    %cst_38 = arith.constant 1.000000e+00 : f32
    %cst_39 = arith.constant 0.000000e+00 : f32
    %80 = vector.broadcast %cst_38 : f32 to vector<40x512xf32>
    %81 = vector.broadcast %cst_39 : f32 to vector<40x512xf32>
    %82 = arith.select %79, %80, %81 : vector<40x512xi1>, vector<40x512xf32>
    %83 = tpu.iota {dimensions = array<i32: 1>} : vector<2x40xi32>
    %84 = arith.sitofp %83 : vector<2x40xi32> to vector<2x40xf32>
    %85 = tpu.iota {dimensions = array<i32: 0>} : vector<2x40xi32>
    %86 = arith.sitofp %85 : vector<2x40xi32> to vector<2x40xf32>
    %cst_40 = arith.constant 2.000000e+01 : f32
    %87 = vector.broadcast %cst_40 : f32 to vector<2x40xf32>
    %88 = arith.divf %84, %87 : vector<2x40xf32>
    %89 = math.floor %88 : vector<2x40xf32>
    %90 = arith.cmpf oeq, %89, %86 : vector<2x40xf32>
    %cst_41 = arith.constant 1.000000e+00 : f32
    %cst_42 = arith.constant 0.000000e+00 : f32
    %91 = vector.broadcast %cst_41 : f32 to vector<2x40xf32>
    %92 = vector.broadcast %cst_42 : f32 to vector<2x40xf32>
    %93 = arith.select %90, %91, %92 : vector<2x40xi1>, vector<2x40xf32>
    %cst_43 = arith.constant dense<0.000000e+00> : vector<40x512xf32>
    %94 = tpu.matmul %45, %62, %cst_43 {dimension_numbers = #tpu.dot_dimension_numbers<[1], [0], [0], [1], [0, 0, 1, 1], [], []>} : vector<40x20xf32>, vector<20x512xf32>, vector<40x512xf32> -> vector<40x512xf32>
    %95 = arith.mulf %94, %82 : vector<40x512xf32>
    %cst_44 = arith.constant dense<0.000000e+00> : vector<2x512xf32>
    %96 = tpu.matmul %93, %95, %cst_44 {dimension_numbers = #tpu.dot_dimension_numbers<[1], [0], [0], [1], [0, 0, 1, 1], [], []>} : vector<2x40xf32>, vector<40x512xf32>, vector<2x512xf32> -> vector<2x512xf32>
    %c0_45 = arith.constant 0 : index
    %c0_46 = arith.constant 0 : index
    %97 = vector.load %arg17[%c0_45, %c0_46] : memref<2x512xf32, #tpu.memory_space<vmem>>, vector<2x512xf32>
    tpu.vector_store %arg17[%c0_45, %c0_46], %96 {strides = array<i32>} : memref<2x512xf32, #tpu.memory_space<vmem>>, vector<2x512xf32>,
    %c0_47 = arith.constant 0 : index
    %c0_48 = arith.constant 0 : index
    %98 = vector.load %arg9[%c0_47, %c0_48] : memref<512x256xf32, #tpu.memory_space<vmem>>, vector<512x256xf32>
    %cst_49 = arith.constant dense<0.000000e+00> : vector<2x256xf32>
    %99 = tpu.matmul %96, %98, %cst_49 {dimension_numbers = #tpu.dot_dimension_numbers<[1], [0], [0], [1], [0, 0, 1, 1], [], []>} : vector<2x512xf32>, vector<512x256xf32>, vector<2x256xf32> -> vector<2x256xf32>
    %c0_50 = arith.constant 0 : index
    %c0_51 = arith.constant 0 : index
    %100 = vector.load %arg10[%c0_50, %c0_51] : memref<1x256xf32, #tpu.memory_space<vmem>>, vector<1x256xf32>
    %101 = vector.broadcast %100 : vector<1x256xf32> to vector<2x256xf32>
    %102 = arith.addf %99, %101 : vector<2x256xf32>
    %cst_52 = arith.constant 0.000000e+00 : f32
    %103 = vector.broadcast %cst_52 : f32 to vector<2x256xf32>
    %104 = arith.cmpf oge, %102, %103 : vector<2x256xf32>
    %cst_53 = arith.constant 0.00999999977 : f32
    %105 = vector.broadcast %cst_53 : f32 to vector<2x256xf32>
    %106 = arith.mulf %105, %102 : vector<2x256xf32>
    %107 = arith.select %104, %102, %106 : vector<2x256xi1>, vector<2x256xf32>
    %c0_54 = arith.constant 0 : index
    %c0_55 = arith.constant 0 : index
    %108 = vector.load %arg11[%c0_54, %c0_55] : memref<256x64xf32, #tpu.memory_space<vmem>>, vector<256x64xf32>
    %cst_56 = arith.constant dense<0.000000e+00> : vector<2x64xf32>
    %109 = tpu.matmul %107, %108, %cst_56 {dimension_numbers = #tpu.dot_dimension_numbers<[1], [0], [0], [1], [0, 0, 1, 1], [], []>} : vector<2x256xf32>, vector<256x64xf32>, vector<2x64xf32> -> vector<2x64xf32>
    %c0_57 = arith.constant 0 : index
    %c0_58 = arith.constant 0 : index
    %110 = vector.load %arg12[%c0_57, %c0_58] : memref<1x64xf32, #tpu.memory_space<vmem>>, vector<1x64xf32>
    %111 = vector.broadcast %110 : vector<1x64xf32> to vector<2x64xf32>
    %112 = arith.addf %109, %111 : vector<2x64xf32>
    %cst_59 = arith.constant 0.000000e+00 : f32
    %113 = vector.broadcast %cst_59 : f32 to vector<2x64xf32>
    %114 = arith.cmpf oge, %112, %113 : vector<2x64xf32>
    %cst_60 = arith.constant 0.00999999977 : f32
    %115 = vector.broadcast %cst_60 : f32 to vector<2x64xf32>
    %116 = arith.mulf %115, %112 : vector<2x64xf32>
    %117 = arith.select %114, %112, %116 : vector<2x64xi1>, vector<2x64xf32>
    %c0_61 = arith.constant 0 : index
    %c0_62 = arith.constant 0 : index
    %118 = vector.load %arg13[%c0_61, %c0_62] : memref<64x32xf32, #tpu.memory_space<vmem>>, vector<64x32xf32>
    %cst_63 = arith.constant dense<0.000000e+00> : vector<2x32xf32>
    %119 = tpu.matmul %117, %118, %cst_63 {dimension_numbers = #tpu.dot_dimension_numbers<[1], [0], [0], [1], [0, 0, 1, 1], [], []>} : vector<2x64xf32>, vector<64x32xf32>, vector<2x32xf32> -> vector<2x32xf32>
    %c0_64 = arith.constant 0 : index
    %c0_65 = arith.constant 0 : index
    %120 = vector.load %arg14[%c0_64, %c0_65] : memref<1x32xf32, #tpu.memory_space<vmem>>, vector<1x32xf32>
    %121 = vector.broadcast %120 : vector<1x32xf32> to vector<2x32xf32>
    %122 = arith.addf %119, %121 : vector<2x32xf32>
    %cst_66 = arith.constant 0.000000e+00 : f32
    %123 = vector.broadcast %cst_66 : f32 to vector<2x32xf32>
    %124 = arith.cmpf oge, %122, %123 : vector<2x32xf32>
    %cst_67 = arith.constant 0.00999999977 : f32
    %125 = vector.broadcast %cst_67 : f32 to vector<2x32xf32>
    %126 = arith.mulf %125, %122 : vector<2x32xf32>
    %127 = arith.select %124, %122, %126 : vector<2x32xi1>, vector<2x32xf32>
    %c0_68 = arith.constant 0 : index
    %c0_69 = arith.constant 0 : index
    %128 = vector.load %arg15[%c0_68, %c0_69] : memref<32x1xf32, #tpu.memory_space<vmem>>, vector<32x1xf32>
    %cst_70 = arith.constant dense<0.000000e+00> : vector<2x1xf32>
    %129 = tpu.matmul %127, %128, %cst_70 {dimension_numbers = #tpu.dot_dimension_numbers<[1], [0], [0], [1], [0, 0, 1, 1], [], []>} : vector<2x32xf32>, vector<32x1xf32>, vector<2x1xf32> -> vector<2x1xf32>
    %c0_71 = arith.constant 0 : index
    %c0_72 = arith.constant 0 : index
    %130 = vector.load %arg16[%c0_71, %c0_72] : memref<1x1xf32, #tpu.memory_space<vmem>>, vector<1x1xf32>
    %131 = vector.broadcast %130 : vector<1x1xf32> to vector<2x1xf32>
    %132 = arith.addf %129, %131 : vector<2x1xf32>
    %133 = math.absf %132 : vector<2x1xf32>
    %cst_73 = arith.constant 0.000000e+00 : f32
    %134 = vector.broadcast %cst_73 : f32 to vector<2x1xf32>
    %135 = arith.subf %134, %133 : vector<2x1xf32>
    %136 = math.exp %135 : vector<2x1xf32>
    %cst_74 = arith.constant 0.000000e+00 : f32
    %137 = vector.broadcast %cst_74 : f32 to vector<2x1xf32>
    %138 = arith.cmpf oge, %132, %137 : vector<2x1xf32>
    %cst_75 = arith.constant 1.000000e+00 : f32
    %139 = vector.broadcast %cst_75 : f32 to vector<2x1xf32>
    %140 = arith.addf %139, %136 : vector<2x1xf32>
    %cst_76 = arith.constant 1.000000e+00 : f32
    %141 = vector.broadcast %cst_76 : f32 to vector<2x1xf32>
    %142 = arith.divf %141, %140 : vector<2x1xf32>
    %cst_77 = arith.constant 1.000000e+00 : f32
    %143 = vector.broadcast %cst_77 : f32 to vector<2x1xf32>
    %144 = arith.addf %143, %136 : vector<2x1xf32>
    %145 = arith.divf %136, %144 : vector<2x1xf32>
    %146 = arith.select %138, %142, %145 : vector<2x1xi1>, vector<2x1xf32>
    %c0_78 = arith.constant 0 : index
    %c0_79 = arith.constant 0 : index
    %147 = vector.load %arg18[%c0_78, %c0_79] : memref<2x1xf32, #tpu.memory_space<vmem>>, vector<2x1xf32>
    tpu.vector_store %arg18[%c0_78, %c0_79], %146 {strides = array<i32>} : memref<2x1xf32, #tpu.memory_space<vmem>>, vector<2x1xf32>,
    return
  }
  func.func @transform_0(%arg0: i32) -> (i32, i32) {
    %c0_i32 = arith.constant 0 : i32
    %c0_i32_0 = arith.constant 0 : i32
    %c0_i32_1 = arith.constant 0 : i32
    return %c0_i32, %c0_i32_0 : i32, i32
  }
  func.func @transform_1(%arg0: i32) -> (i32, i32) {
    %c0_i32 = arith.constant 0 : i32
    %c0_i32_0 = arith.constant 0 : i32
    %c0_i32_1 = arith.constant 0 : i32
    return %c0_i32, %c0_i32_0 : i32, i32
  }
  func.func @transform_2(%arg0: i32) -> (i32, i32) {
    %c0_i32 = arith.constant 0 : i32
    %c0_i32_0 = arith.constant 0 : i32
    %c0_i32_1 = arith.constant 0 : i32
    return %c0_i32, %c0_i32_0 : i32, i32
  }
  func.func @transform_3(%arg0: i32) -> (i32, i32) {
    %c0_i32 = arith.constant 0 : i32
    %c0_i32_0 = arith.constant 0 : i32
    %c0_i32_1 = arith.constant 0 : i32
    return %c0_i32, %c0_i32_0 : i32, i32
  }
  func.func @transform_4(%arg0: i32) -> (i32, i32) {
    %c0_i32 = arith.constant 0 : i32
    %c0_i32_0 = arith.constant 0 : i32
    %c0_i32_1 = arith.constant 0 : i32
    return %c0_i32, %c0_i32_0 : i32, i32
  }
  func.func @transform_5(%arg0: i32) -> (i32, i32) {
    %c0_i32 = arith.constant 0 : i32
    %c0_i32_0 = arith.constant 0 : i32
    %c0_i32_1 = arith.constant 0 : i32
    return %c0_i32, %c0_i32_0 : i32, i32
  }
  func.func @transform_6(%arg0: i32) -> (i32, i32) {
    %c0_i32 = arith.constant 0 : i32
    %c0_i32_0 = arith.constant 0 : i32
    %c0_i32_1 = arith.constant 0 : i32
    return %c0_i32, %c0_i32_0 : i32, i32
  }
  func.func @transform_7(%arg0: i32) -> (i32, i32) {
    %c0_i32 = arith.constant 0 : i32
    %c0_i32_0 = arith.constant 0 : i32
    %c0_i32_1 = arith.constant 0 : i32
    return %c0_i32, %c0_i32_0 : i32, i32
  }
  func.func @transform_8(%arg0: i32) -> (i32, i32) {
    %c0_i32 = arith.constant 0 : i32
    %c0_i32_0 = arith.constant 0 : i32
    %c0_i32_1 = arith.constant 0 : i32
    return %c0_i32, %c0_i32_0 : i32, i32
  }
  func.func @transform_9(%arg0: i32) -> (i32, i32) {
    %c0_i32 = arith.constant 0 : i32
    %c0_i32_0 = arith.constant 0 : i32
    %c0_i32_1 = arith.constant 0 : i32
    return %c0_i32, %c0_i32_0 : i32, i32
  }
  func.func @transform_10(%arg0: i32) -> (i32, i32) {
    %c0_i32 = arith.constant 0 : i32
    %c0_i32_0 = arith.constant 0 : i32
    %c0_i32_1 = arith.constant 0 : i32
    return %c0_i32, %c0_i32_0 : i32, i32
  }
  func.func @transform_11(%arg0: i32) -> (i32, i32) {
    %c0_i32 = arith.constant 0 : i32
    %c0_i32_0 = arith.constant 0 : i32
    %c0_i32_1 = arith.constant 0 : i32
    return %c0_i32, %c0_i32_0 : i32, i32
  }
  func.func @transform_12(%arg0: i32) -> (i32, i32) {
    %c0_i32 = arith.constant 0 : i32
    %c0_i32_0 = arith.constant 0 : i32
    %c0_i32_1 = arith.constant 0 : i32
    return %c0_i32, %c0_i32_0 : i32, i32
  }
  func.func @transform_13(%arg0: i32) -> (i32, i32) {
    %c0_i32 = arith.constant 0 : i32
    %c0_i32_0 = arith.constant 0 : i32
    %c0_i32_1 = arith.constant 0 : i32
    return %c0_i32, %c0_i32_0 : i32, i32
  }
  func.func @transform_14(%arg0: i32) -> (i32, i32) {
    %c0_i32 = arith.constant 0 : i32
    %c0_i32_0 = arith.constant 0 : i32
    %c0_i32_1 = arith.constant 0 : i32
    return %c0_i32, %c0_i32_0 : i32, i32
  }
  func.func @transform_15(%arg0: i32) -> (i32, i32) {
    %c0_i32 = arith.constant 0 : i32
    %c0_i32_0 = arith.constant 0 : i32
    %c0_i32_1 = arith.constant 0 : i32
    return %c0_i32, %c0_i32_0 : i32, i32
  }
  func.func @transform_16(%arg0: i32) -> (i32, i32) {
    %c0_i32 = arith.constant 0 : i32
    %c0_i32_0 = arith.constant 0 : i32
    %c0_i32_1 = arith.constant 0 : i32
    return %c0_i32, %c0_i32_0 : i32, i32
  }
  func.func @transform_17(%arg0: i32) -> (i32, i32) {
    %c0_i32 = arith.constant 0 : i32
    %c0_i32_0 = arith.constant 0 : i32
    %c0_i32_1 = arith.constant 0 : i32
    return %c0_i32, %c0_i32_0 : i32, i32
  }
}

</mosaic_0001>

<bundles_post_ra>
// kernel: discriminator_forward.1
= control target key start
LH: loop header
LB: loop body
LE: loop exit
PB: predicated region body
PF: predicated region fallthrough
CT: control target
= control target key end

     0   :  { %vm3941_vm0 = vcmask 326656   ;;  %v2637_v17 = vmov 0.0|0.0   ;;  %vm3939_vm1 = vmmov 0   ;;  %v2639_v21 = vmov 0.0   ;;  %s3919_s0 = inlined_call_operand.vmem [shape: f32[40,8], index: 0, kind: input, shape index: {}]   ;;  %s3920_s1 = inlined_call_operand.vmem [shape: f32[80,40], index: 1, kind: input, shape index: {}]   ;;  %s3921_s2 = inlined_call_operand.vmem [shape: f32[16,128], index: 2, kind: input, shape index: {}]   ;;  %s3922_s4 = inlined_call_operand.vmem [shape: f32[256,128], index: 4, kind: input, shape index: {}]   ;;  %s3923_s3 = inlined_call_operand.vmem [shape: f32[1,128], index: 3, kind: input, shape index: {}]   ;;  %s3924_s6 = inlined_call_operand.vmem [shape: f32[128,20], index: 6, kind: input, shape index: {}]   ;;  %s3925_s5 = inlined_call_operand.vmem [shape: f32[1,128], index: 5, kind: input, shape index: {}]   ;;  %s3926_s7 = inlined_call_operand.vmem [shape: f32[1,20], index: 7, kind: input, shape index: {}]   ;;  %s3927_s8 = inlined_call_operand.vmem [shape: f32[512,256], index: 8, kind: input, shape index: {}]   ;;  %s3928_s10 = inlined_call_operand.vmem [shape: f32[256,64], index: 10, kind: input, shape index: {}]   ;;  %s3929_s16 = inlined_call_operand.vmem [shape: f32[2,512], index: 16, kind: output, shape index: {0}]   ;;  %s3930_s9 = inlined_call_operand.vmem [shape: f32[1,256], index: 9, kind: input, shape index: {}]   ;;  %s3931_s12 = inlined_call_operand.vmem [shape: f32[64,32], index: 12, kind: input, shape index: {}]   ;;  %s3932_s11 = inlined_call_operand.vmem [shape: f32[1,64], index: 11, kind: input, shape index: {}]   ;;  %s3933_s14 = inlined_call_operand.vmem [shape: f32[32,1], index: 14, kind: input, shape index: {}]   ;;  %s3934_s15 = inlined_call_operand.<no memory space> [shape: f32[1,1], index: 15, kind: input, shape index: {}]   ;;  %s3935_s13 = inlined_call_operand.vmem [shape: f32[1,32], index: 13, kind: input, shape index: {}]   ;;  %s3936_s17 = inlined_call_operand.vmem [shape: f32[2,1], index: 17, kind: output, shape index: {1}]  }
   0x1   :  { %3944 = sst [smem:[#allocation3_spill]] %s3919_s0  ;;  %2334 = vmatprep.subr.bf16.mxu1 %v2637_v17  ;;  %v244_v18 = vld [vmem:[%s3921_s2] sm:$0xff]  ;;  %v245_v19 = vld [vmem:[%s3921_s2 + $0x8] sm:$0xff]  ;;  %2209 = vmatprep.mubr.msk.f32.mxu1 %vm3939_vm1, %v2639_v21  ;;  %vm238_vm2 = vcmask 64512   ;;  %vm246_vm3 = vcmask 130048   ;;  %v532_v47 = vld [vmem:[%s3922_s4 + $0x90] sm:$0xff] }
   0x2   :  { %3945 = sst [smem:[#allocation4_spill]] %s3920_s1  ;;  %s3946_s26 = sld [smem:[#allocation3_spill]]  ;;  %v2335_v20 = vpack.c.bf16 %v245_v19, %v244_v18  ;;  %v530_v42 = vld [vmem:[%s3922_s4 + $0x80] sm:$0xff]  ;;  %v531_v43 = vld [vmem:[%s3922_s4 + $0x88] sm:$0xff]  ;;  %v533_v48 = vld [vmem:[%s3922_s4 + $0x98] sm:$0xff] }
   0x3   :  { %s3947_s20 = sld [smem:[#allocation4_spill]]  ;;  %v514_v44 = vld [vmem:[%s3922_s4] sm:$0xff]  ;;  %v2345_v45 = vpack.c.bf16 %v531_v43, %v530_v42  ;;  %v515_v46 = vld [vmem:[%s3922_s4 + $0x8] sm:$0xff]  ;;  %v2349_v50 = vpack.c.bf16 %v533_v48, %v532_v47  ;;  %v516_v51 = vld [vmem:[%s3922_s4 + $0x10] sm:$0xff] }
   0x4   :  { %2336 = vmatpush3.bf16.msra.mxu1 %v2335_v20  ;;  %v2347_v49 = vpack.c.bf16 %v515_v46, %v514_v44  ;;  %v517_v52 = vld [vmem:[%s3922_s4 + $0x18] sm:$0xff]  ;;  %v534_v53 = vld [vmem:[%s3922_s4 + $0xa0] sm:$0xff]  ;;  %v535_v54 = vld [vmem:[%s3922_s4 + $0xa8] sm:$0xff] }
   0x5   :  { %v2351_v55 = vpack.c.bf16 %v517_v52, %v516_v51  ;;  %v2353_v56 = vpack.c.bf16 %v535_v54, %v534_v53  ;;  %v518_v57 = vld [vmem:[%s3922_s4 + $0x20] sm:$0xff]  ;;  %v519_v58 = vld [vmem:[%s3922_s4 + $0x28] sm:$0xff]  ;;  %v536_v59 = vld [vmem:[%s3922_s4 + $0xb0] sm:$0xff] }
   0x6   :  { %v537_v60 = vld [vmem:[%s3922_s4 + $0xb8] sm:$0xff]  ;;  %v2355_v61 = vpack.c.bf16 %v519_v58, %v518_v57  ;;  %v520_v63 = vld [vmem:[%s3922_s4 + $0x30] sm:$0xff] }
   0x7   :  { %v2357_v62 = vpack.c.bf16 %v537_v60, %v536_v59  ;;  %v541_v18 = vld [vmem:[%s3922_s4 + $0xd8] sm:$0xff] }
   0x8   :  { %v57_v0 = vld [vmem:[%s3946_s26] sm:$0xff]  ;;  %v58_v1 = vld [vmem:[%s3946_s26 + $0x8] sm:$0xff]  ;;  %v59_v2 = vld [vmem:[%s3946_s26 + $0x10] sm:$0xff] }
   0x9   :  { %v2326_v3 = vpack.c.bf16 %v58_v1, %v57_v0  ;;  %v60_v4 = vld [vmem:[%s3946_s26 + $0x18] sm:$0xff]  ;;  %v2748_v5 = vld [vmem:[%s3947_s20] sm:$0xff]  ;;  %v2758_v8 = vld [vmem:[%s3947_s20 + $0x8] sm:$0xff] }
   0xa   :  { %v2330_v6 = vpack.c.bf16 %v60_v4, %v59_v2  ;;  %2190 = vmatprep.mubr.msk.f32.mxu0 %vm3941_vm0, %v2748_v5  ;;  %v61_v7 = vld [vmem:[%s3946_s26 + $0x20] sm:$0xff]  ;;  %v2763_v9 = vld [vmem:[%s3947_s20 + $0x10] sm:$0xff]  ;;  %v2772_v10 = vld [vmem:[%s3947_s20 + $0x18] sm:$0xff] }
   0xb   :  { %2327 = vmatprep.subr.bf16.mxu0 %v2326_v3  ;;  %v2777_v11 = vld [vmem:[%s3947_s20 + $0x20] sm:$0xff]  ;;  %v2786_v12 = vld [vmem:[%s3947_s20 + $0x28] sm:$0xff]  ;;  %v2791_v13 = vld [vmem:[%s3947_s20 + $0x30] sm:$0xff] }
   0xc   :  { %2329 = vmatpush3.bf16.msra.mxu0 %v2326_v3  ;;  %v2800_v14 = vld [vmem:[%s3947_s20 + $0x38] sm:$0xff]  ;;  %v2805_v15 = vld [vmem:[%s3947_s20 + $0x40] sm:$0xff]  ;;  %v2814_v16 = vld [vmem:[%s3947_s20 + $0x48] sm:$0xff]  ;;  %s2640_s20 = smov 8  }
   0xd   :  { %2331 = vmatprep.subr.bf16.mxu0 %v2330_v6  ;;  %v521_v0 = vld [vmem:[%s3922_s4 + $0x38] sm:$0xff]  ;;  %v538_v1 = vld [vmem:[%s3922_s4 + $0xc0] sm:$0xff]  ;;  %v539_v2 = vld [vmem:[%s3922_s4 + $0xc8] sm:$0xff] }
   0xe   :  { %v2359_v3 = vpack.c.bf16 %v521_v0, %v520_v63  ;;  %v2361_v4 = vpack.c.bf16 %v539_v2, %v538_v1 }
  0x10   :  { %2333 = vmatpush3.bf16.msra.mxu0 %v2330_v6  ;;  %v523_v6 = vld [vmem:[%s3922_s4 + $0x48] sm:$0xff] }
  0x11   :  { %2188 = vmatprep.subr.mxu0 %v61_v7 }
  0x14   :  { %2189 = vmatpush3.msra.mxu0 %v61_v7  ;;  %v540_v7 = vld [vmem:[%s3922_s4 + $0xd0] sm:$0xff] }
  0x15   :  { %2191 = vmatmul.mubr.msk.f32.vlgmr.msra.gmra.mrb[0].mxu0 %vm3941_vm0, %v2758_v8  ;;  %2346 = vmatprep.subr.bf16.mxu0 %v2345_v45  ;;  %v2365_v20 = vpack.c.bf16 %v541_v18, %v540_v7 }
  0x16   :  { %2193 = vmatprep.mubr.msk.f32.mxu0 %vm3941_vm0, %v2763_v9  ;;  %2348 = vmatpush3.bf16.msra.mxu0 %v2347_v49 }
  0x17   :  { %2350 = vmatprep.subr.bf16.mxu0 %v2349_v50 }
  0x19   :  { %2194 = vmatmul.mubr.msk.f32.gmra.mrb[2].mxu0 %vm3941_vm0, %v2772_v10 }
  0x1a   :  { %2196 = vmatprep.mubr.msk.f32.mxu0 %vm3941_vm0, %v2777_v11  ;;  %2352 = vmatpush3.bf16.msra.mxu0 %v2351_v55 }
  0x1b   :  { %2354 = vmatprep.subr.bf16.mxu0 %v2353_v56 }
  0x1d   :  { %2197 = vmatmul.mubr.msk.f32.gmra.mrb[4].mxu0 %vm3941_vm0, %v2786_v12 }
  0x1e   :  { %2199 = vmatprep.mubr.msk.f32.mxu0 %vm3941_vm0, %v2791_v13  ;;  %2356 = vmatpush3.bf16.msra.mxu0 %v2355_v61 }
  0x1f   :  { %2358 = vmatprep.subr.bf16.mxu0 %v2357_v62 }
  0x21   :  { %2200 = vmatmul.mubr.msk.f32.gmra.mrb[6].mxu0 %vm3941_vm0, %v2800_v14 }
  0x22   :  { %2202 = vmatprep.mubr.msk.f32.mxu0 %vm3941_vm0, %v2805_v15  ;;  %2360 = vmatpush3.bf16.msra.mxu0 %v2359_v3 }
  0x23   :  { %2362 = vmatprep.subr.bf16.mxu0 %v2361_v4 }
  0x25   :  { %2203 = vmatmul.mubr.msk.f32.gmra.mrb[8].mxu0 %vm3941_vm0, %v2814_v16 }
  0xe8   :  { %v2192_v22 = vpop.f32.mrb[0].mxu0 }
  0xe9   :  { %v169_v23 = vpop.f32.mrb[1].mxu0 }
  0xec   :  { %v2195_v24 = vpop.f32.mrb[2].mxu0 }
  0xed   :  { %v179_v25 = vpop.f32.mrb[3].mxu0 }
  0xf0   :  { %v2198_v26 = vpop.f32.mrb[4].mxu0 }
  0xf1   :  { %223 = vrot.lane.b32.xlu0 %v2198_v26, %s2640_s20  ;;  %v189_v27 = vpop.f32.mrb[5].mxu0  ;;  %v1974_v26 = vld [vmem:[%s3923_s3] ss:$0 sm:$0xff] }
  0xf4   :  { %v2201_v28 = vpop.f32.mrb[6].mxu0 }
  0xf5   :  { %227 = vrot.lane.b32.xlu1 %v2201_v28, %s2640_s20  ;;  %v199_v29 = vpop.f32.mrb[7].mxu0 }
  0xf6   :  { %225 = vrot.lane.b32.xlu0 %v199_v29, %s2640_s20 }
  0xf8   :  { %v2204_v30 = vpop.f32.mrb[8].mxu0 }
  0xf9   :  { %v209_v31 = vpop.f32.mrb[9].mxu0 }
  0xfa   :  { %231 = vrot.lane.b32.xlu0 %v2204_v30, %s2640_s20  ;;  %229 = vrot.lane.b32.xlu1 %v209_v31, %s2640_s20 }
 0x163   :  { %v224_v32 = vpop.permute.xlu0 %223 }
 0x164   :  { %v239_v33 = vsel %vm238_vm2, %v169_v23, %v224_v32  ;;  %v525_v23 = vld [vmem:[%s3922_s4 + $0x58] sm:$0xff] }
 0x165   :  { %2210 = vmatmul.mubr.msk.f32.vlgmr.msra.gmra.mrb[0].mxu1 %vm246_vm3, %v239_v33 }
 0x166   :  { %2212 = vmatprep.mubr.msk.f32.mxu1 %vm3939_vm1, %v2639_v21 }
 0x167   :  { %v228_v34 = vpop.permute.xlu1 %227 }
 0x168   :  { %v226_v35 = vpop.permute.xlu0 %225  ;;  %v241_v37 = vsel %vm238_vm2, %v179_v25, %v228_v34 }
 0x169   :  { %v240_v36 = vsel %vm238_vm2, %v2192_v22, %v226_v35  ;;  %v524_v22 = vld [vmem:[%s3922_s4 + $0x50] sm:$0xff] }
 0x16a   :  { %2213 = vmatmul.mubr.msk.f32.gmra.mrb[2].mxu1 %vm246_vm3, %v240_v36 }
 0x16b   :  { %2215 = vmatprep.mubr.msk.f32.mxu1 %vm3939_vm1, %v2639_v21 }
 0x16c   :  { %v230_v38 = vpop.permute.xlu1 %229  ;;  %v232_v40 = vpop.permute.xlu0 %231 }
 0x16d   :  { %v242_v39 = vsel %vm238_vm2, %v2195_v24, %v230_v38  ;;  %v243_v41 = vsel %vm238_vm2, %v189_v27, %v232_v40  ;;  %v2367_v24 = vpack.c.bf16 %v525_v23, %v524_v22 }
 0x16e   :  { %2216 = vmatmul.mubr.msk.f32.gmra.mrb[4].mxu1 %vm246_vm3, %v241_v37 }
 0x16f   :  { %2218 = vmatprep.mubr.msk.f32.mxu1 %vm3939_vm1, %v2639_v21 }
 0x172   :  { %2219 = vmatmul.mubr.msk.f32.gmra.mrb[6].mxu1 %vm246_vm3, %v242_v39 }
 0x173   :  { %2221 = vmatprep.mubr.msk.f32.mxu1 %vm3939_vm1, %v2639_v21 }
 0x176   :  { %2222 = vmatmul.mubr.msk.f32.gmra.mrb[8].mxu1 %vm246_vm3, %v243_v41 }
 0x177   :  { %2234 = vmatprep.mubr.msk.f32.mxu1 %vm3941_vm0, %v2748_v5  ;;  %v522_v5 = vld [vmem:[%s3922_s4 + $0x40] sm:$0xff] }
 0x178   :  { %v2363_v19 = vpack.c.bf16 %v523_v6, %v522_v5 }
 0x17a   :  { %2364 = vmatpush3.bf16.msra.mxu0 %v2363_v19  ;;  %v528_v19 = vld [vmem:[%s3922_s4 + $0x70] sm:$0xff] }
 0x17b   :  { %2366 = vmatprep.subr.bf16.mxu0 %v2365_v20  ;;  %v529_v20 = vld [vmem:[%s3922_s4 + $0x78] sm:$0xff] }
 0x17c   :  { %v2375_v22 = vpack.c.bf16 %v529_v20, %v528_v19 }
 0x17e   :  { %2368 = vmatpush3.bf16.msra.mxu0 %v2367_v24 }
 0x238   :  { %v328_v25 = vpop.f32.mrb[0].mxu1 }
 0x239   :  { %v352_v27 = vmul.f32 2.0, %v328_v25  ;;  %v2211_v28 = vpop.f32.mrb[1].mxu1 }
 0x23b   :  { %v364_v29 = vadd.f32 %v1974_v26, %v352_v27  ;;  %v684_v27 = vld [vmem:[%s3924_s6 + $0x8] sm:$0xff] }
 0x23d   :  { %v374_v30 = vmin.f32 %v364_v29, 0.0  ;;  %v333_v31 = vpop.f32.mrb[2].mxu1  ;;  %vm369_vm4 = vcmp.gt.f32.partialorder %v364_v29, 0.0 }
 0x23e   :  { %v353_v32 = vmul.f32 2.0, %v333_v31  ;;  %v2214_v33 = vpop.f32.mrb[3].mxu1 }
 0x23f   :  { %v379_v34 = vmul.f32 1.442695, %v374_v30  ;;  %v686_v33 = vld [vmem:[%s3924_s6 + $0x18] sm:$0xff] }
 0x240   :  { %v365_v35 = vadd.f32 %v1974_v26, %v353_v32  ;;  %v685_v32 = vld [vmem:[%s3924_s6 + $0x10] sm:$0xff] }
 0x241   :  { %v338_v36 = vpop.f32.mrb[4].mxu1  ;;  %2613 = vpow2.f32 %v379_v34 }
 0x242   :  { %v375_v37 = vmin.f32 %v365_v35, 0.0  ;;  %v354_v38 = vmul.f32 2.0, %v338_v36  ;;  %v2217_v39 = vpop.f32.mrb[5].mxu1  ;;  %vm370_vm5 = vcmp.gt.f32.partialorder %v365_v35, 0.0 }
 0x243   :  { %v687_v39 = vld [vmem:[%s3924_s6 + $0x20] sm:$0xff] }
 0x244   :  { %v381_v40 = vmul.f32 1.442695, %v375_v37  ;;  %v366_v41 = vadd.f32 %v1974_v26, %v354_v38 }
 0x245   :  { %v343_v42 = vpop.f32.mrb[6].mxu1 }
 0x246   :  { %2615 = vpow2.f32 %v381_v40  ;;  %v376_v43 = vmin.f32 %v366_v41, 0.0  ;;  %v355_v44 = vmul.f32 2.0, %v343_v42  ;;  %v2220_v45 = vpop.f32.mrb[7].mxu1  ;;  %vm371_vm6 = vcmp.gt.f32.partialorder %v366_v41, 0.0  ;;  %v688_v40 = vld [vmem:[%s3924_s6 + $0x28] sm:$0xff]  ;;  %v689_v42 = vld [vmem:[%s3924_s6 + $0x30] sm:$0xff] }
 0x247   :  { %v691_v45 = vld [vmem:[%s3924_s6 + $0x40] sm:$0xff] }
 0x248   :  { %v383_v46 = vmul.f32 1.442695, %v376_v43  ;;  %v367_v47 = vadd.f32 %v1974_v26, %v355_v44  ;;  %v690_v43 = vld [vmem:[%s3924_s6 + $0x38] sm:$0xff] }
 0x249   :  { %v348_v48 = vpop.f32.mrb[8].mxu1  ;;  %v2387_v44 = vpack.c.bf16 %v690_v43, %v689_v42 }
 0x24a   :  { %2617 = vpow2.f32 %v383_v46  ;;  %v377_v49 = vmin.f32 %v367_v47, 0.0  ;;  %v356_v50 = vmul.f32 2.0, %v348_v48  ;;  %v2223_v51 = vpop.f32.mrb[9].mxu1  ;;  %vm372_vm7 = vcmp.gt.f32.partialorder %v367_v47, 0.0  ;;  %v692_v46 = vld [vmem:[%s3924_s6 + $0x48] sm:$0xff]  ;;  %v693_v48 = vld [vmem:[%s3924_s6 + $0x50] sm:$0xff] }
 0x24b   :  { %v2614_v52 = vpop.eup %2613  ;;  %v695_v51 = vld [vmem:[%s3924_s6 + $0x60] sm:$0xff] }
 0x24c   :  { %v385_v53 = vmul.f32 1.442695, %v377_v49  ;;  %v368_v54 = vadd.f32 %v1974_v26, %v356_v50  ;;  %v1975_v56 = vadd.f32 -1.0, %v2614_v52  ;;  %v683_v26 = vld [vmem:[%s3924_s6] sm:$0xff]  ;;  %v694_v49 = vld [vmem:[%s3924_s6 + $0x58] sm:$0xff]  ;;  %v696_v52 = vld [vmem:[%s3924_s6 + $0x68] sm:$0xff] }
 0x24d   :  { %v2393_v50 = vpack.c.bf16 %v694_v49, %v693_v48 }
 0x24e   :  { %2619 = vpow2.f32 %v385_v53  ;;  %v378_v55 = vmin.f32 %v368_v54, 0.0  ;;  %v394_v60 = vsel %vm369_vm4, %v364_v29, %v1975_v56  ;;  %vm373_vm8 = vcmp.gt.f32.partialorder %v368_v54, 0.0 }
 0x24f   :  { %v2378_v29 = vpack.c.bf16 %v684_v27, %v683_v26  ;;  %v2396_v53 = vpack.c.bf16 %v696_v52, %v695_v51 }
 0x250   :  { %v2616_v57 = vpop.eup %2615  ;;  %v387_v58 = vmul.f32 1.442695, %v378_v55  ;;  %v698_v55 = vld [vmem:[%s3924_s6 + $0x78] sm:$0xff] }
 0x251   :  { %v1976_v59 = vadd.f32 -1.0, %v2616_v57  ;;  %v796_v57 = vlaneseq }
 0x252   :  { %2621 = vpow2.f32 %v387_v58 }
 0x253   :  { %v395_v61 = vsel %vm370_vm5, %v365_v35, %v1976_v59  ;;  %v2381_v35 = vpack.c.bf16 %v686_v33, %v685_v32  ;;  %v797_v58 = vand.u32 127, %v796_v57 }
 0x254   :  { %v2618_v62 = vpop.eup %2617  ;;  %v2337_v63 = vpack.c.bf16 %v395_v61, %v394_v60  ;;  %v3023_v60 = vshrl.u32 %v796_v57, 7 }
 0x255   :  { %v1977_v0 = vadd.f32 -1.0, %v2618_v62  ;;  %v798_v59 = vadd.s32 128, %v797_v58  ;;  %v800_v61 = vadd.s32 384, %v797_v58  ;;  %v799_v62 = vadd.s32 256, %v797_v58 }
 0x256   :  { %2338 = vmatprep.subr.bf16.mxu1 %v2337_v63  ;;  %v3088_v19 = vcvt.s32.f32 %v797_v58 }
 0x257   :  { %2340 = vmatpush3.bf16.msra.mxu1 %v2337_v63  ;;  %v396_v3 = vsel %vm371_vm6, %v366_v41, %v1977_v0  ;;  %v2384_v41 = vpack.c.bf16 %v688_v40, %v687_v39  ;;  %v3025_v63 = vcvt.s32.f32 %v798_v59  ;;  %v3027_v0 = vcvt.s32.f32 %v800_v61 }
 0x258   :  { %v2620_v1 = vpop.eup %2619 }
 0x259   :  { %v1978_v2 = vadd.f32 -1.0, %v2620_v1  ;;  %v3029_v1 = vcvt.s32.f32 %v799_v62  ;;  %vm3943_vm9 = vcmp.lt.f32.partialorder %v3025_v63, 400.0  ;;  %vm844_vm15 = vcmp.lt.f32.partialorder %v3027_v0, 400.0 }
 0x25b   :  { %v397_v4 = vsel %vm372_vm7, %v367_v47, %v1978_v2  ;;  %v2390_v47 = vpack.c.bf16 %v692_v46, %v691_v45  ;;  %v807_v2 = vadd.s32 8, %v3023_v60  ;;  %vm3942_vm6 = vcmp.lt.f32.partialorder %v3029_v1, 400.0 }
 0x25c   :  { %v2622_v5 = vpop.eup %2621  ;;  %v2341_v6 = vpack.c.bf16 %v397_v4, %v396_v3  ;;  %v814_v3 = vmul.f32 0.05, %v3025_v63  ;;  %v816_v4 = vmul.f32 0.05, %v3027_v0 }
 0x25d   :  { %v1979_v7 = vadd.f32 -1.0, %v2622_v5  ;;  %v815_v5 = vmul.f32 0.05, %v3029_v1 }
 0x25e   :  { %2342 = vmatprep.subr.bf16.mxu1 %v2341_v6 }
 0x25f   :  { %2344 = vmatpush3.bf16.msra.mxu1 %v2341_v6  ;;  %v398_v18 = vsel %vm373_vm8, %v368_v54, %v1979_v7  ;;  %v697_v54 = vld [vmem:[%s3924_s6 + $0x70] sm:$0xff]  ;;  %v3035_v6 = vfloor.f32 %v814_v3  ;;  %v3037_v7 = vfloor.f32 %v816_v4 }
 0x260   :  { %2232 = vmatprep.subr.mxu1 %v398_v18  ;;  %v2399_v56 = vpack.c.bf16 %v698_v55, %v697_v54 }
 0x263   :  { %2233 = vmatpush3.msra.mxu1 %v398_v18  ;;  %v3039_v18 = vfloor.f32 %v815_v5 }
 0x264   :  { %2235 = vmatmul.mubr.msk.f32.vlgmr.msra.gmra.mrb[10].mxu1 %vm3941_vm0, %v2758_v8  ;;  %v542_v8 = vld [vmem:[%s3922_s4 + $0xe0] sm:$0xff] }
 0x265   :  { %2237 = vmatprep.mubr.msk.f32.mxu1 %vm3941_vm0, %v2763_v9  ;;  %v543_v9 = vld [vmem:[%s3922_s4 + $0xe8] sm:$0xff] }
 0x268   :  { %2238 = vmatmul.mubr.msk.f32.gmra.mrb[12].mxu1 %vm3941_vm0, %v2772_v10  ;;  %v2369_v10 = vpack.c.bf16 %v543_v9, %v542_v8  ;;  %v3042_v8 = vcvt.s32.f32 %v3023_v60  ;;  %v3044_v9 = vcvt.s32.f32 %v807_v2 }
 0x269   :  { %2240 = vmatprep.mubr.msk.f32.mxu1 %vm3941_vm0, %v2777_v11  ;;  %v526_v11 = vld [vmem:[%s3922_s4 + $0x60] sm:$0xff] }
 0x26a   :  { %2370 = vmatprep.subr.bf16.mxu0 %v2369_v10  ;;  %v822_v10 = vmul.f32 20.0, %v3035_v6 }
 0x26c   :  { %2241 = vmatmul.mubr.msk.f32.gmra.mrb[14].mxu1 %vm3941_vm0, %v2786_v12  ;;  %v527_v12 = vld [vmem:[%s3922_s4 + $0x68] sm:$0xff] }
 0x26d   :  { %2243 = vmatprep.mubr.msk.f32.mxu1 %vm3941_vm0, %v2791_v13  ;;  %v2371_v13 = vpack.c.bf16 %v527_v12, %v526_v11  ;;  %v824_v11 = vmul.f32 20.0, %v3037_v7  ;;  %v823_v12 = vmul.f32 20.0, %v3039_v18 }
 0x26f   :  { %2372 = vmatpush3.bf16.msra.mxu0 %v2371_v13  ;;  %v3050_v13 = vsub.f32 %v3025_v63, %v822_v10 }
 0x270   :  { %2244 = vmatmul.mubr.msk.f32.gmra.mrb[16].mxu1 %vm3941_vm0, %v2800_v14  ;;  %v544_v14 = vld [vmem:[%s3922_s4 + $0xf0] sm:$0xff] }
 0x271   :  { %2246 = vmatprep.mubr.msk.f32.mxu1 %vm3941_vm0, %v2805_v15  ;;  %v545_v15 = vld [vmem:[%s3922_s4 + $0xf8] sm:$0xff]  ;;  %vm830_vm10 = vcmp.eq.f32.partialorder %v3050_v13, %v3042_v8  ;;  %vm834_vm11 = vcmp.eq.f32.partialorder %v3050_v13, %v3044_v9 }
 0x272   :  { %vm846_vm12 = vmand %vm830_vm10, %vm3943_vm9 }
 0x273   :  { %vm850_vm13 = vmand %vm834_vm11, %vm3943_vm9 }
 0x274   :  { %2247 = vmatmul.mubr.msk.f32.gmra.mrb[18].mxu1 %vm3941_vm0, %v2814_v16  ;;  %v2373_v16 = vpack.c.bf16 %v545_v15, %v544_v14  ;;  %v3054_v14 = vsub.f32 %v3027_v0, %v824_v11  ;;  %v3063_v15 = vsub.f32 %v3029_v1, %v823_v12  ;;  %vm2401_vm2 = vmpackc.low %vm850_vm13, %vm846_vm12 }
 0x275   :  { %1143 = vmatprep.mubr.f32.mxu1 %v2639_v21 }
 0x276   :  { %2374 = vmatprep.subr.bf16.mxu0 %v2373_v16  ;;  %vm832_vm14 = vcmp.eq.f32.partialorder %v3054_v14, %v3042_v8  ;;  %vm836_vm3 = vcmp.eq.f32.partialorder %v3054_v14, %v3044_v9  ;;  %v2641_v16 = vmov 1.0|1.0   ;;  %vm831_vm5 = vcmp.eq.f32.partialorder %v3063_v15, %v3042_v8 }
 0x277   :  { %2376 = vmatpush3.bf16.msra.mxu0 %v2375_v22  ;;  %vm848_vm4 = vmand %vm832_vm14, %vm844_vm15  ;;  %vm835_vm8 = vcmp.eq.f32.partialorder %v3063_v15, %v3044_v9  ;;  %vm841_vm14 = vcmp.lt.f32.partialorder %v3088_v19, 400.0 }
 0x278   :  { %2377 = vmatprep.subr.bf16.mxu0 %v2637_v17  ;;  %vm852_vm7 = vmand %vm836_vm3, %vm844_vm15 }
 0x279   :  { %vm2405_vm10 = vmpackc.low %vm852_vm7, %vm848_vm4 }
 0x27a   :  { %2406 = vmatprep.subr.msk.bf16.mxu1 %vm2405_vm10, %v2641_v16  ;;  %vm847_vm11 = vmand %vm831_vm5, %vm3942_vm6 }
 0x27b   :  { %vm851_vm12 = vmand %vm835_vm8, %vm3942_vm6 }
 0x27c   :  { %vm2407_vm13 = vmpackc.low %vm851_vm12, %vm847_vm11 }
 0x27d   :  { %2408 = vmatpush1.bf16.msk.msra.mxu1 %vm2407_vm13, %v2641_v16 }
 0x337   :  { %v2236_v23 = vpop.f32.mrb[10].mxu1 }
 0x338   :  { %v465_v24 = vpop.f32.mrb[11].mxu1 }
 0x33b   :  { %v2239_v25 = vpop.f32.mrb[12].mxu1 }
 0x33c   :  { %v475_v28 = vpop.f32.mrb[13].mxu1 }
 0x33f   :  { %v2242_v30 = vpop.f32.mrb[14].mxu1 }
 0x340   :  { %v485_v31 = vpop.f32.mrb[15].mxu1  ;;  %610 = vmatprep.mubr.f32.mxu0 %v2242_v30 }
 0x341   :  { %611 = vmatmul.mubr.f32.vlgmr.msra.gmra.mrb[10].mxu0 %v465_v24 }
 0x342   :  { %2379 = vmatpush3.bf16.msra.mxu0 %v2378_v29 }
 0x343   :  { %v2245_v34 = vpop.f32.mrb[16].mxu1  ;;  %2380 = vmatprep.subr.bf16.mxu0 %v2637_v17 }
 0x344   :  { %v495_v36 = vpop.f32.mrb[17].mxu1 }
 0x345   :  { %615 = vmatprep.mubr.f32.mxu0 %v495_v36 }
 0x346   :  { %616 = vmatmul.mubr.f32.gmra.mrb[12].mxu0 %v2236_v23  ;;  %v813_v23 = vmul.f32 0.05, %v3088_v19 }
 0x347   :  { %620 = vmatprep.mubr.f32.mxu0 %v2245_v34  ;;  %v2248_v37 = vpop.f32.mrb[18].mxu1  ;;  %2382 = vmatpush3.bf16.msra.mxu0 %v2381_v35 }
 0x348   :  { %v505_v38 = vpop.f32.mrb[19].mxu1  ;;  %2383 = vmatprep.subr.bf16.mxu0 %v2637_v17 }
 0x34a   :  { %621 = vmatmul.mubr.f32.gmra.mrb[14].mxu0 %v475_v28  ;;  %v3094_v28 = vfloor.f32 %v813_v23 }
 0x34b   :  { %625 = vmatprep.mubr.f32.mxu0 %v505_v38  ;;  %2385 = vmatpush3.bf16.msra.mxu0 %v2384_v41 }
 0x34c   :  { %2386 = vmatprep.subr.bf16.mxu0 %v2637_v17  ;;  %v821_v35 = vmul.f32 20.0, %v3094_v28 }
 0x34e   :  { %626 = vmatmul.mubr.f32.gmra.mrb[16].mxu0 %v2239_v25  ;;  %v1990_v25 = vld [vmem:[%s3925_s5] ss:$0 sm:$0xff]  ;;  %v3098_v43 = vsub.f32 %v3088_v19, %v821_v35 }
 0x34f   :  { %630 = vmatprep.mubr.f32.mxu0 %v2248_v37  ;;  %2388 = vmatpush3.bf16.msra.mxu0 %v2387_v44 }
 0x350   :  { %2389 = vmatprep.subr.bf16.mxu0 %v2637_v17  ;;  %vm833_vm3 = vcmp.eq.f32.partialorder %v3098_v43, %v3044_v9 }
 0x351   :  { %vm849_vm5 = vmand %vm833_vm3, %vm841_vm14 }
 0x352   :  { %631 = vmatmul.mubr.f32.gmra.mrb[18].mxu0 %v485_v31 }
 0x353   :  { %2281 = vmatprep.mubr.msk.f32.mxu0 %vm3939_vm1, %v2639_v21  ;;  %2391 = vmatpush3.bf16.msra.mxu0 %v2390_v47 }
 0x354   :  { %2392 = vmatprep.subr.bf16.mxu0 %v2637_v17 }
 0x357   :  { %2394 = vmatpush3.bf16.msra.mxu0 %v2393_v50 }
 0x358   :  { %2395 = vmatprep.subr.bf16.mxu0 %v2637_v17 }
 0x35b   :  { %2397 = vmatpush3.bf16.msra.mxu0 %v2396_v53 }
 0x35c   :  { %2398 = vmatprep.subr.bf16.mxu0 %v2637_v17 }
 0x35f   :  { %2400 = vmatpush3.bf16.msra.mxu0 %v2399_v56 }
 0x360   :  { %2402 = vmatprep.subr.msk.bf16.mxu0 %vm2401_vm2, %v2641_v16  ;;  %vm829_vm2 = vcmp.eq.f32.partialorder %v3098_v43, %v3042_v8 }
 0x361   :  { %vm3107_vm4 = vmand %vm829_vm2, %vm841_vm14 }
 0x362   :  { %vm2403_vm8 = vmpackc.low %vm849_vm5, %vm3107_vm4 }
 0x414   :  { %v2095_v20 = vpop.f32.mrb[10].mxu0 }
 0x415   :  { %v2096_v22 = vpop.f32.mrb[11].mxu0 }
 0x416   :  { %v2097_v24 = vadd.f32 %v2096_v22, %v2095_v20 }
 0x418   :  { %v636_v26 = vmul.f32 2.0, %v2097_v24 }
 0x419   :  { %v2098_v27 = vpop.f32.mrb[12].mxu0 }
 0x41a   :  { %v648_v29 = vadd.f32 %v1990_v25, %v636_v26  ;;  %v2099_v30 = vpop.f32.mrb[13].mxu0 }
 0x41b   :  { %v2100_v31 = vadd.f32 %v2099_v30, %v2098_v27 }
 0x41c   :  { %v658_v32 = vmin.f32 %v648_v29, 0.0  ;;  %vm653_vm7 = vcmp.gt.f32.partialorder %v648_v29, 0.0 }
 0x41d   :  { %v637_v33 = vmul.f32 2.0, %v2100_v31  ;;  %v2101_v34 = vpop.f32.mrb[14].mxu0 }
 0x41e   :  { %v663_v36 = vmul.f32 1.442695, %v658_v32  ;;  %v2102_v37 = vpop.f32.mrb[15].mxu0  ;;  %v1996_v32 = vld [vmem:[%s3926_s7] ss:$0 sm:$0xff] }
 0x41f   :  { %v649_v38 = vadd.f32 %v1990_v25, %v637_v33  ;;  %v2103_v39 = vadd.f32 %v2102_v37, %v2101_v34 }
 0x420   :  { %2623 = vpow2.f32 %v663_v36 }
 0x421   :  { %v659_v40 = vmin.f32 %v649_v38, 0.0  ;;  %v638_v41 = vmul.f32 2.0, %v2103_v39  ;;  %v2104_v42 = vpop.f32.mrb[16].mxu0  ;;  %vm654_vm10 = vcmp.gt.f32.partialorder %v649_v38, 0.0 }
 0x422   :  { %v2105_v44 = vpop.f32.mrb[17].mxu0 }
 0x423   :  { %v665_v45 = vmul.f32 1.442695, %v659_v40  ;;  %v650_v46 = vadd.f32 %v1990_v25, %v638_v41  ;;  %v2106_v47 = vadd.f32 %v2105_v44, %v2104_v42 }
 0x425   :  { %2625 = vpow2.f32 %v665_v45  ;;  %v660_v48 = vmin.f32 %v650_v46, 0.0  ;;  %v639_v49 = vmul.f32 2.0, %v2106_v47  ;;  %v2107_v50 = vpop.f32.mrb[18].mxu0  ;;  %vm655_vm11 = vcmp.gt.f32.partialorder %v650_v46, 0.0 }
 0x426   :  { %v2108_v51 = vpop.f32.mrb[19].mxu0 }
 0x427   :  { %v667_v52 = vmul.f32 1.442695, %v660_v48  ;;  %v651_v53 = vadd.f32 %v1990_v25, %v639_v49  ;;  %v2109_v54 = vadd.f32 %v2108_v51, %v2107_v50  ;;  %v1363_v48 = vld [vmem:[%s3927_s8 + $0x8] sm:$0xff]  ;;  %v1365_v49 = vld [vmem:[%s3927_s8 + $0x18] sm:$0xff]  ;;  %v1362_v50 = vld [vmem:[%s3927_s8] sm:$0xff] }
 0x428   :  { %v2425_v51 = vpack.c.bf16 %v1365_v49, %v1363_v48  ;;  %v1394_v49 = vld [vmem:[%s3927_s8 + $0x100] sm:$0xff] }
 0x429   :  { %2627 = vpow2.f32 %v667_v52  ;;  %v661_v56 = vmin.f32 %v651_v53, 0.0  ;;  %v640_v57 = vmul.f32 2.0, %v2109_v54  ;;  %vm656_vm12 = vcmp.gt.f32.partialorder %v651_v53, 0.0  ;;  %v1364_v52 = vld [vmem:[%s3927_s8 + $0x10] sm:$0xff]  ;;  %v1369_v54 = vld [vmem:[%s3927_s8 + $0x38] sm:$0xff] }
 0x42a   :  { %v2624_v58 = vpop.eup %2623  ;;  %v2427_v55 = vpack.c.bf16 %v1364_v52, %v1362_v50  ;;  %v1396_v50 = vld [vmem:[%s3927_s8 + $0x110] sm:$0xff]  ;;  %v1401_v52 = vld [vmem:[%s3927_s8 + $0x138] sm:$0xff] }
 0x42b   :  { %v669_v59 = vmul.f32 1.442695, %v661_v56  ;;  %v652_v61 = vadd.f32 %v1990_v25, %v640_v57  ;;  %v1991_v62 = vadd.f32 -1.0, %v2624_v58  ;;  %v1366_v57 = vld [vmem:[%s3927_s8 + $0x20] sm:$0xff]  ;;  %v1368_v58 = vld [vmem:[%s3927_s8 + $0x30] sm:$0xff] }
 0x42d   :  { %2629 = vpow2.f32 %v669_v59  ;;  %v662_v2 = vmin.f32 %v652_v61, 0.0  ;;  %v678_v3 = vsel %vm653_vm7, %v648_v29, %v1991_v62  ;;  %vm657_vm13 = vcmp.gt.f32.partialorder %v652_v61, 0.0  ;;  %v1371_v59 = vld [vmem:[%s3927_s8 + $0x48] sm:$0xff] }
 0x42e   :  { %2282 = vmatmul.mubr.f32.vlgmr.msra.gmra.mrb[20].mxu0 %v678_v3  ;;  %v808_v29 = vadd.s32 16, %v3023_v60  ;;  %v2431_v62 = vpack.c.bf16 %v1368_v58, %v1366_v57  ;;  %v1370_v3 = vld [vmem:[%s3927_s8 + $0x40] sm:$0xff]  ;;  %v1403_v57 = vld [vmem:[%s3927_s8 + $0x148] sm:$0xff]  ;;  %v1405_v58 = vld [vmem:[%s3927_s8 + $0x158] sm:$0xff] }
 0x42f   :  { %v2626_v4 = vpop.eup %2625  ;;  %v671_v5 = vmul.f32 1.442695, %v662_v2  ;;  %2284 = vmatprep.mubr.msk.f32.mxu0 %vm3939_vm1, %v2639_v21  ;;  %2404 = vmatpush1.bf16.msk.msra.mxu0 %vm2403_vm8, %v2641_v16  ;;  %vm971_vm8 = vcmask 1043456  }
 0x430   :  { %v1992_v10 = vadd.f32 -1.0, %v2626_v4  ;;  %v3126_v30 = vcvt.s32.f32 %v808_v29  ;;  %v1372_v4 = vld [vmem:[%s3927_s8 + $0x50] sm:$0xff]  ;;  %v1383_v29 = vld [vmem:[%s3927_s8 + $0xa8] sm:$0xff] }
 0x431   :  { %2631 = vpow2.f32 %v671_v5  ;;  %v1375_v5 = vld [vmem:[%s3927_s8 + $0x68] sm:$0xff] }
 0x432   :  { %v679_v11 = vsel %vm654_vm10, %v649_v38, %v1992_v10  ;;  %vm838_vm2 = vcmp.eq.f32.partialorder %v3050_v13, %v3126_v30  ;;  %vm840_vm3 = vcmp.eq.f32.partialorder %v3054_v14, %v3126_v30  ;;  %vm837_vm5 = vcmp.eq.f32.partialorder %v3098_v43, %v3126_v30  ;;  %v1377_v10 = vld [vmem:[%s3927_s8 + $0x78] sm:$0xff] }
 0x433   :  { %v2628_v12 = vpop.eup %2627  ;;  %2285 = vmatmul.mubr.f32.gmra.mrb[22].mxu0 %v679_v11  ;;  %vm854_vm4 = vmand %vm838_vm2, %vm3943_vm9  ;;  %vm839_vm7 = vcmp.eq.f32.partialorder %v3063_v15, %v3126_v30  ;;  %v2435_v11 = vpack.c.bf16 %v1372_v4, %v1370_v3  ;;  %v1407_v3 = vld [vmem:[%s3927_s8 + $0x168] sm:$0xff]  ;;  %v1409_v4 = vld [vmem:[%s3927_s8 + $0x178] sm:$0xff] }
 0x434   :  { %2287 = vmatprep.mubr.msk.f32.mxu0 %vm3939_vm1, %v2639_v21  ;;  %v1993_v20 = vadd.f32 -1.0, %v2628_v12  ;;  %v866_v31 = vsel %vm854_vm4, 1.0, %v2639_v21  ;;  %vm856_vm10 = vmand %vm840_vm3, %vm844_vm15  ;;  %v2437_v12 = vpack.c.bf16 %v1377_v10, %v1375_v5  ;;  %v2469_v10 = vpack.c.bf16 %v1409_v4, %v1407_v3 }
 0x435   :  { %2001 = vmatprep.subr.msk.mxu0 %vm971_vm8, %v866_v31  ;;  %v868_v13 = vsel %vm856_vm10, 1.0, %v2639_v21  ;;  %v1385_v31 = vld [vmem:[%s3927_s8 + $0xb8] sm:$0xff] }
 0x436   :  { %v680_v22 = vsel %vm655_vm11, %v650_v46, %v1993_v20  ;;  %vm853_vm11 = vmand %vm837_vm5, %vm841_vm14  ;;  %2012 = vmatprep.subr.msk.mxu1 %vm971_vm8, %v868_v13  ;;  %v1374_v20 = vld [vmem:[%s3927_s8 + $0x60] sm:$0xff] }
 0x437   :  { %v2630_v23 = vpop.eup %2629  ;;  %2288 = vmatmul.mubr.f32.gmra.mrb[24].mxu0 %v680_v22  ;;  %v865_v14 = vsel %vm853_vm11, 1.0, %v2639_v21  ;;  %v1376_v22 = vld [vmem:[%s3927_s8 + $0x70] sm:$0xff] }
 0x438   :  { %2290 = vmatprep.mubr.msk.f32.mxu0 %vm3939_vm1, %v2639_v21  ;;  %v1994_v24 = vadd.f32 -1.0, %v2630_v23  ;;  %2002 = vmatpush1.msk.msra.mxu0 %vm971_vm8, %v865_v14  ;;  %v1379_v23 = vld [vmem:[%s3927_s8 + $0x88] sm:$0xff]  ;;  %v2445_v14 = vpack.c.bf16 %v1385_v31, %v1383_v29 }
 0x43a   :  { %v681_v16 = vsel %vm656_vm12, %v651_v53, %v1994_v24  ;;  %vm855_vm12 = vmand %vm839_vm7, %vm3942_vm6  ;;  %v1367_v53 = vld [vmem:[%s3927_s8 + $0x28] sm:$0xff]  ;;  %v1381_v24 = vld [vmem:[%s3927_s8 + $0x98] sm:$0xff] }
 0x43b   :  { %v2632_v25 = vpop.eup %2631  ;;  %2291 = vmatmul.mubr.f32.gmra.mrb[26].mxu0 %v681_v16  ;;  %v867_v15 = vsel %vm855_vm12, 1.0, %v2639_v21  ;;  %v2429_v56 = vpack.c.bf16 %v1369_v54, %v1367_v53  ;;  %v2439_v16 = vpack.c.bf16 %v1376_v22, %v1374_v20  ;;  %v2459_v53 = vpack.c.bf16 %v1396_v50, %v1394_v49  ;;  %v1411_v20 = vld [vmem:[%s3927_s8 + $0x188] sm:$0xff]  ;;  %v1413_v22 = vld [vmem:[%s3927_s8 + $0x198] sm:$0xff] }
 0x43c   :  { %2293 = vmatprep.mubr.msk.f32.mxu0 %vm3939_vm1, %v2639_v21  ;;  %v1995_v26 = vadd.f32 -1.0, %v2632_v25  ;;  %2013 = vmatpush1.msk.msra.mxu1 %vm971_vm8, %v867_v15  ;;  %v2441_v25 = vpack.c.bf16 %v1381_v24, %v1379_v23  ;;  %v1382_v15 = vld [vmem:[%s3927_s8 + $0xa0] sm:$0xff]  ;;  %v2473_v24 = vpack.c.bf16 %v1413_v22, %v1411_v20  ;;  %v875_v50 = vmul.f32 0.05, %v3126_v30 }
 0x43d   :  { %2426 = vmatprep.subr.bf16.mxu1 %v2425_v51  ;;  %v1399_v51 = vld [vmem:[%s3927_s8 + $0x128] sm:$0xff] }
 0x43e   :  { %v682_v27 = vsel %vm657_vm13, %v652_v61, %v1995_v26  ;;  %vm955_vm13 = vcmask 162816   ;;  %v1373_v61 = vld [vmem:[%s3927_s8 + $0x58] sm:$0xff]  ;;  %v1378_v26 = vld [vmem:[%s3927_s8 + $0x80] sm:$0xff]  ;;  %v2461_v54 = vpack.c.bf16 %v1401_v52, %v1399_v51  ;;  %v870_v52 = vadd.s32 32, %v3023_v60 }
 0x43f   :  { %2294 = vmatmul.mubr.f32.gmra.mrb[28].mxu0 %v682_v27  ;;  %v2433_v2 = vpack.c.bf16 %v1373_v61, %v1371_v59  ;;  %v1380_v27 = vld [vmem:[%s3927_s8 + $0x90] sm:$0xff]  ;;  %v2465_v61 = vpack.c.bf16 %v1405_v58, %v1403_v57 }
 0x440   :  { %1048 = vmatprep.mubr.f32.mxu0 %v2639_v21  ;;  %v2443_v13 = vpack.c.bf16 %v1380_v27, %v1378_v26  ;;  %v1415_v26 = vld [vmem:[%s3927_s8 + $0x1a8] sm:$0xff]  ;;  %v1417_v27 = vld [vmem:[%s3927_s8 + $0x1b8] sm:$0xff]  ;;  %v872_v57 = vcvt.s32.f32 %v870_v52  ;;  %v1670_v52 = vld [vmem:[%s3928_s10 + $0xa0] sm:$0xff] }
 0x441   :  { %v2477_v31 = vpack.c.bf16 %v1417_v27, %v1415_v26 }
 0x501   :  { %v772_v33 = vpop.f32.mrb[20].mxu0 }
 0x502   :  { %v773_v34 = vadd.f32 %v1996_v32, %v772_v33  ;;  %v2283_v35 = vpop.f32.mrb[21].mxu0  ;;  %v1387_v33 = vld [vmem:[%s3927_s8 + $0xc8] sm:$0xff] }
 0x504   :  { %2003 = vmatmul.mubr.msk.f32.vlgmr.msra.gmra.mrb[30].mxu0 %vm955_vm13, %v773_v34  ;;  %2014 = vmatmul.mubr.msk.f32.vlgmr.msra.gmra.mrb[20].mxu1 %vm955_vm13, %v773_v34  ;;  %v1389_v34 = vld [vmem:[%s3927_s8 + $0xd8] sm:$0xff] }
 0x505   :  { %1054 = vmatprep.mubr.f32.mxu0 %v2639_v21  ;;  %1149 = vmatprep.mubr.f32.mxu1 %v2639_v21 }
 0x506   :  { %v777_v36 = vpop.f32.mrb[22].mxu0  ;;  %2428 = vmatpush1.bf16.msra.mxu1 %v2427_v55  ;;  %v1398_v55 = vld [vmem:[%s3927_s8 + $0x120] sm:$0xff] }
 0x507   :  { %v778_v37 = vadd.f32 %v1996_v32, %v777_v36  ;;  %v2286_v38 = vpop.f32.mrb[23].mxu0  ;;  %2430 = vmatprep.subr.bf16.mxu1 %v2429_v56  ;;  %v2449_v36 = vpack.c.bf16 %v1389_v34, %v1387_v33  ;;  %v1400_v56 = vld [vmem:[%s3927_s8 + $0x130] sm:$0xff] }
 0x508   :  { %v1388_v38 = vld [vmem:[%s3927_s8 + $0xd0] sm:$0xff]  ;;  %v2463_v59 = vpack.c.bf16 %v1400_v56, %v1398_v55  ;;  %v880_v55 = vfloor.f32 %v875_v50 }
 0x509   :  { %2004 = vmatmul.mubr.msk.f32.gmra.mrb[32].mxu0 %vm955_vm13, %v778_v37  ;;  %2015 = vmatmul.mubr.msk.f32.gmra.mrb[22].mxu1 %vm955_vm13, %v778_v37  ;;  %v1386_v37 = vld [vmem:[%s3927_s8 + $0xc0] sm:$0xff] }
 0x50a   :  { %v782_v39 = vpop.f32.mrb[24].mxu0  ;;  %1060 = vmatprep.mubr.f32.mxu0 %v2639_v21  ;;  %1155 = vmatprep.mubr.f32.mxu1 %v2639_v21 }
 0x50b   :  { %v783_v40 = vadd.f32 %v1996_v32, %v782_v39  ;;  %v2289_v41 = vpop.f32.mrb[25].mxu0  ;;  %2432 = vmatpush1.bf16.msra.mxu1 %v2431_v62  ;;  %v1391_v39 = vld [vmem:[%s3927_s8 + $0xe8] sm:$0xff]  ;;  %v1402_v62 = vld [vmem:[%s3927_s8 + $0x140] sm:$0xff] }
 0x50c   :  { %2434 = vmatprep.subr.bf16.mxu1 %v2433_v2  ;;  %v2451_v41 = vpack.c.bf16 %v1388_v38, %v1386_v37  ;;  %v1404_v2 = vld [vmem:[%s3927_s8 + $0x150] sm:$0xff]  ;;  %v1423_v37 = vld [vmem:[%s3927_s8 + $0x1e8] sm:$0xff]  ;;  %v1425_v38 = vld [vmem:[%s3927_s8 + $0x1f8] sm:$0xff] }
 0x50d   :  { %2005 = vmatmul.mubr.msk.f32.gmra.mrb[34].mxu0 %vm955_vm13, %v783_v40  ;;  %2016 = vmatmul.mubr.msk.f32.gmra.mrb[24].mxu1 %vm955_vm13, %v783_v40  ;;  %v1393_v40 = vld [vmem:[%s3927_s8 + $0xf8] sm:$0xff]  ;;  %v2467_v5 = vpack.c.bf16 %v1404_v2, %v1402_v62  ;;  %v877_v62 = vmul.f32 0.05, %v872_v57 }
 0x50e   :  { %v787_v42 = vpop.f32.mrb[26].mxu0  ;;  %1066 = vmatprep.mubr.f32.mxu0 %v2639_v21  ;;  %1161 = vmatprep.mubr.f32.mxu1 %v2639_v21 }
 0x50f   :  { %v788_v43 = vadd.f32 %v1996_v32, %v787_v42  ;;  %v2292_v44 = vpop.f32.mrb[27].mxu0  ;;  %2436 = vmatpush1.bf16.msra.mxu1 %v2435_v11  ;;  %v2453_v42 = vpack.c.bf16 %v1393_v40, %v1391_v39  ;;  %v1406_v11 = vld [vmem:[%s3927_s8 + $0x160] sm:$0xff]  ;;  %v2485_v40 = vpack.c.bf16 %v1425_v38, %v1423_v37 }
 0x510   :  { %2438 = vmatprep.subr.bf16.mxu1 %v2437_v12  ;;  %v1392_v44 = vld [vmem:[%s3927_s8 + $0xf0] sm:$0xff] }
 0x511   :  { %2006 = vmatmul.mubr.msk.f32.gmra.mrb[36].mxu0 %vm955_vm13, %v788_v43  ;;  %2017 = vmatmul.mubr.msk.f32.gmra.mrb[26].mxu1 %vm955_vm13, %v788_v43  ;;  %v1390_v43 = vld [vmem:[%s3927_s8 + $0xe0] sm:$0xff]  ;;  %v1408_v12 = vld [vmem:[%s3927_s8 + $0x170] sm:$0xff] }
 0x512   :  { %v792_v45 = vpop.f32.mrb[28].mxu0  ;;  %1072 = vmatprep.mubr.f32.mxu0 %v2639_v21  ;;  %1167 = vmatprep.mubr.f32.mxu1 %v2639_v21  ;;  %v2471_v23 = vpack.c.bf16 %v1408_v12, %v1406_v11  ;;  %v882_v11 = vfloor.f32 %v877_v62 }
 0x513   :  { %v793_v46 = vadd.f32 %v1996_v32, %v792_v45  ;;  %v2295_v47 = vpop.f32.mrb[29].mxu0  ;;  %2440 = vmatpush1.bf16.msra.mxu1 %v2439_v16  ;;  %v1384_v32 = vld [vmem:[%s3927_s8 + $0xb0] sm:$0xff]  ;;  %v1395_v45 = vld [vmem:[%s3927_s8 + $0x108] sm:$0xff]  ;;  %v1410_v16 = vld [vmem:[%s3927_s8 + $0x180] sm:$0xff] }
 0x514   :  { %2442 = vmatprep.subr.bf16.mxu1 %v2441_v25  ;;  %v2447_v35 = vpack.c.bf16 %v1384_v32, %v1382_v15  ;;  %v2455_v47 = vpack.c.bf16 %v1392_v44, %v1390_v43  ;;  %v1412_v25 = vld [vmem:[%s3927_s8 + $0x190] sm:$0xff]  ;;  %v1419_v15 = vld [vmem:[%s3927_s8 + $0x1c8] sm:$0xff]  ;;  %v1421_v32 = vld [vmem:[%s3927_s8 + $0x1d8] sm:$0xff]  ;;  %v873_v44 = vmul.f32 0.05, %v3042_v8  ;;  %v887_v26 = vmul.f32 20.0, %v882_v11 }
 0x515   :  { %2007 = vmatmul.mubr.msk.f32.gmra.mrb[38].mxu0 %vm955_vm13, %v793_v46  ;;  %2018 = vmatmul.mubr.msk.f32.gmra.mrb[28].mxu1 %vm955_vm13, %v793_v46  ;;  %v1397_v46 = vld [vmem:[%s3927_s8 + $0x118] sm:$0xff]  ;;  %v2475_v29 = vpack.c.bf16 %v1412_v25, %v1410_v16  ;;  %v2481_v34 = vpack.c.bf16 %v1421_v32, %v1419_v15 }
 0x516   :  { %1261 = vmatprep.mubr.f32.mxu0 %v2639_v21  ;;  %v2457_v48 = vpack.c.bf16 %v1397_v46, %v1395_v45  ;;  %v878_v45 = vfloor.f32 %v873_v44  ;;  %v874_v46 = vmul.f32 0.05, %v3044_v9 }
 0x517   :  { %2444 = vmatpush1.bf16.msra.mxu1 %v2443_v13  ;;  %v1414_v13 = vld [vmem:[%s3927_s8 + $0x1a0] sm:$0xff] }
 0x518   :  { %2446 = vmatprep.subr.bf16.mxu1 %v2445_v14  ;;  %v1416_v14 = vld [vmem:[%s3927_s8 + $0x1b0] sm:$0xff]  ;;  %v879_v49 = vfloor.f32 %v874_v46 }
 0x519   :  { %v2479_v33 = vpack.c.bf16 %v1416_v14, %v1414_v13 }
 0x51b   :  { %2448 = vmatpush1.bf16.msra.mxu1 %v2447_v35  ;;  %v1418_v35 = vld [vmem:[%s3927_s8 + $0x1c0] sm:$0xff] }
 0x51c   :  { %2450 = vmatprep.subr.bf16.mxu1 %v2449_v36  ;;  %v1420_v36 = vld [vmem:[%s3927_s8 + $0x1d0] sm:$0xff] }
 0x51d   :  { %v2483_v39 = vpack.c.bf16 %v1420_v36, %v1418_v35 }
 0x51f   :  { %2452 = vmatpush1.bf16.msra.mxu1 %v2451_v41  ;;  %v1422_v41 = vld [vmem:[%s3927_s8 + $0x1e0] sm:$0xff] }
 0x520   :  { %2454 = vmatprep.subr.bf16.mxu1 %v2453_v42  ;;  %v1424_v42 = vld [vmem:[%s3927_s8 + $0x1f0] sm:$0xff] }
 0x521   :  { %v2487_v43 = vpack.c.bf16 %v1424_v42, %v1422_v41 }
 0x523   :  { %2456 = vmatpush1.bf16.msra.mxu1 %v2455_v47  ;;  %v869_v47 = vadd.s32 24, %v3023_v60 }
 0x524   :  { %2458 = vmatprep.subr.bf16.mxu1 %v2457_v48  ;;  %v883_v48 = vmul.f32 20.0, %v878_v45 }
 0x525   :  { %v871_v51 = vcvt.s32.f32 %v869_v47  ;;  %v1669_v47 = vld [vmem:[%s3928_s10 + $0x98] sm:$0xff] }
 0x527   :  { %2460 = vmatpush1.bf16.msra.mxu1 %v2459_v53  ;;  %v888_v53 = vsub.f32 %v3042_v8, %v883_v48  ;;  %v876_v56 = vmul.f32 0.05, %v871_v51 }
 0x528   :  { %2462 = vmatprep.subr.bf16.mxu1 %v2461_v54  ;;  %v884_v54 = vmul.f32 20.0, %v879_v49 }
 0x529   :  { %vm893_vm2 = vcmp.eq.f32.partialorder %v888_v53, %v3094_v28  ;;  %vm895_vm3 = vcmp.eq.f32.partialorder %v888_v53, %v3039_v18  ;;  %vm894_vm4 = vcmp.eq.f32.partialorder %v888_v53, %v3035_v6  ;;  %vm896_vm7 = vcmp.eq.f32.partialorder %v888_v53, %v3037_v7 }
 0x52a   :  { %v889_v58 = vsub.f32 %v3044_v9, %v884_v54  ;;  %vm3374_vm5 = vmand %vm893_vm2, %vm841_vm14 }
 0x52b   :  { %2464 = vmatpush1.bf16.msra.mxu1 %v2463_v59  ;;  %v885_v59 = vmul.f32 20.0, %v880_v55  ;;  %vm3381_vm8 = vmand %vm895_vm3, %vm3942_vm6  ;;  %v933_v27 = vsel %vm3374_vm5, 1.0, %v2639_v21  ;;  %vm3966_vm5 = vcmp.lt.f32.partialorder %v3029_v1, 400.0  ;;  %v1427_v1 = vld [vmem:[%s3927_s8 + $0x208] sm:$0xff] }
 0x52c   :  { %2466 = vmatprep.subr.bf16.mxu1 %v2465_v61  ;;  %v881_v61 = vfloor.f32 %v876_v56  ;;  %vm897_vm10 = vcmp.eq.f32.partialorder %v889_v58, %v3094_v28  ;;  %vm3389_vm11 = vmand %vm894_vm4, %vm3943_vm9  ;;  %vm899_vm12 = vcmp.eq.f32.partialorder %v889_v58, %v3039_v18  ;;  %vm898_vm2 = vcmp.eq.f32.partialorder %v889_v58, %v3035_v6 }
 0x52d   :  { %v890_v9 = vsub.f32 %v3126_v30, %v885_v59  ;;  %vm3396_vm13 = vmand %vm896_vm7, %vm844_vm15  ;;  %vm900_vm4 = vcmp.eq.f32.partialorder %v889_v58, %v3037_v7  ;;  %v934_v13 = vsel %vm3389_vm11, 1.0, %v2639_v21 }
 0x52e   :  { %v886_v4 = vmul.f32 20.0, %v881_v61  ;;  %vm3403_vm3 = vmand %vm897_vm10, %vm841_vm14 }
 0x52f   :  { %2468 = vmatpush1.bf16.msra.mxu1 %v2467_v5  ;;  %vm3410_vm1 = vmand %vm899_vm12, %vm3942_vm6  ;;  %vm901_vm7 = vcmp.eq.f32.partialorder %v890_v9, %v3094_v28  ;;  %vm903_vm10 = vcmp.eq.f32.partialorder %v890_v9, %v3039_v18  ;;  %vm902_vm6 = vcmp.eq.f32.partialorder %v890_v9, %v3035_v6  ;;  %v937_v14 = vsel %vm3403_vm3, 1.0, %v2639_v21 }
 0x530   :  { %2470 = vmatprep.subr.bf16.mxu1 %v2469_v10  ;;  %v891_v20 = vsub.f32 %v871_v51, %v886_v4  ;;  %vm3417_vm0 = vmand %vm898_vm2, %vm3943_vm9  ;;  %vm904_vm9 = vcmp.eq.f32.partialorder %v890_v9, %v3037_v7  ;;  %v939_v15 = vsel %vm3410_vm1, 1.0, %v2639_v21  ;;  %vm3969_vm1 = vcmp.lt.f32.partialorder %v3025_v63, 400.0 }
 0x531   :  { %vm920_vm12 = vmand %vm900_vm4, %vm844_vm15 }
 0x532   :  { %vm3433_vm2 = vmand %vm901_vm7, %vm841_vm14  ;;  %vm905_vm4 = vcmp.eq.f32.partialorder %v891_v20, %v3094_v28  ;;  %v940_v35 = vsel %vm920_vm12, 1.0, %v2639_v21  ;;  %vm907_vm3 = vcmp.eq.f32.partialorder %v891_v20, %v3039_v18 }
 0x533   :  { %2472 = vmatpush1.bf16.msra.mxu1 %v2471_v23  ;;  %vm3463_vm11 = vmand %vm902_vm6, %vm3969_vm1  ;;  %v941_v2 = vsel %vm3433_vm2, 1.0, %v2639_v21 }
 0x534   :  { %2474 = vmatprep.subr.bf16.mxu1 %v2473_v24  ;;  %vm3470_vm7 = vmand %vm904_vm9, %vm844_vm15 }
 0x535   :  { %vm3486_vm9 = vmand %vm905_vm4, %vm841_vm14  ;;  %v944_v5 = vsel %vm3470_vm7, 1.0, %v2639_v21  ;;  %vm953_vm7 = vcmp.eq.f32.partialorder %v3094_v28, %v3042_v8 }
 0x536   :  { %vm3976_vm6 = vmmov %vm3966_vm5  ;;  %v945_v9 = vsel %vm3486_vm9, 1.0, %v2639_v21  ;;  %vm3983_vm9 = vcmask 326656  }
 0x537   :  { %2476 = vmatpush1.bf16.msra.mxu1 %v2475_v29  ;;  %v935_v29 = vsel %vm3381_vm8, 1.0, %v2639_v21  ;;  %vm3449_vm8 = vmand %vm903_vm10, %vm3966_vm5 }
 0x538   :  { %2478 = vmatprep.subr.bf16.mxu1 %v2477_v31  ;;  %vm3494_vm10 = vmand %vm907_vm3, %vm3976_vm6  ;;  %v943_v3 = vsel %vm3449_vm8, 1.0, %v2639_v21 }
 0x539   :  { %vm3979_vm12 = vmmov %vm3969_vm1  ;;  %v947_v4 = vsel %vm3494_vm10, 1.0, %v2639_v21 }
 0x53a   :  { %vm3982_vm8 = vmmov %vm3979_vm12 }
 0x53b   :  { %2480 = vmatpush1.bf16.msra.mxu1 %v2479_v33  ;;  %v936_v33 = vsel %vm3396_vm13, 1.0, %v2639_v21  ;;  %vm908_vm13 = vcmp.eq.f32.partialorder %v891_v20, %v3037_v7 }
 0x53c   :  { %2482 = vmatprep.subr.bf16.mxu1 %v2481_v34  ;;  %v938_v34 = vsel %vm3417_vm0, 1.0, %v2639_v21  ;;  %vm906_vm0 = vcmp.eq.f32.partialorder %v891_v20, %v3035_v6  ;;  %vm928_vm4 = vmand %vm908_vm13, %vm844_vm15 }
 0x53d   :  { %vm3504_vm5 = vmand %vm906_vm0, %vm3979_vm12  ;;  %v948_v11 = vsel %vm928_vm4, 1.0, %v2639_v21  ;;  %vm3985_vm4 = vmmov 0  }
 0x53e   :  { %v946_v10 = vsel %vm3504_vm5, 1.0, %v2639_v21 }
 0x53f   :  { %2484 = vmatpush1.bf16.msra.mxu1 %v2483_v39  ;;  %v954_v39 = vsel %vm953_vm7, 1.0, %v2639_v21 }
 0x540   :  { %2486 = vmatprep.subr.bf16.mxu1 %v2485_v40  ;;  %v3476_v40 = vsub.f32 %v872_v57, %v887_v26 }
 0x542   :  { %vm910_vm1 = vcmp.eq.f32.partialorder %v3476_v40, %v3035_v6  ;;  %v942_v6 = vsel %vm3463_vm11, 1.0, %v2639_v21  ;;  %vm909_vm2 = vcmp.eq.f32.partialorder %v3476_v40, %v3094_v28  ;;  %vm912_vm0 = vcmp.eq.f32.partialorder %v3476_v40, %v3037_v7 }
 0x543   :  { %2488 = vmatpush1.bf16.msra.mxu1 %v2487_v43  ;;  %vm930_vm3 = vmand %vm910_vm1, %vm3982_vm8 }
 0x544   :  { %vm929_vm11 = vmand %vm909_vm2, %vm841_vm14  ;;  %vm911_vm14 = vcmp.eq.f32.partialorder %v3476_v40, %v3039_v18  ;;  %v1429_v18 = vld [vmem:[%s3927_s8 + $0x218] sm:$0xff]  ;;  %vm1777_vm2 = vcmask 523264  }
 0x545   :  { %vm932_vm13 = vmand %vm912_vm0, %vm844_vm15  ;;  %v2489_v40 = vpack.c.bf16 %v1429_v18, %v1427_v1 }
 0x546   :  { %vm931_vm10 = vmand %vm911_vm14, %vm3976_vm6  ;;  %v952_v7 = vsel %vm932_vm13, 1.0, %v2639_v21 }
 0x547   :  { %v951_v8 = vsel %vm931_vm10, 1.0, %v2639_v21  ;;  %vm3984_vm15 = vmmov %vm3983_vm9  ;;  %2490 = vmatprep.subr.bf16.mxu1 %v2489_v40  ;;  %v1438_v40 = vld [vmem:[%s3927_s8 + $0x260] sm:$0xff] }
 0x5d7   :  { %v1050_v22 = vpop.f32.mrb[30].mxu0  ;;  %v1145_v23 = vpop.f32.mrb[20].mxu1 }
 0x5d8   :  { %v1052_v16 = vpop.f32.mrb[31].mxu0  ;;  %v1147_v25 = vpop.f32.mrb[21].mxu1  ;;  %v1174_v41 = vmul.f32 %v1050_v22, %v933_v27  ;;  %v3478_v42 = vmul.f32 %v1145_v23, %v935_v29 }
 0x5d9   :  { %v1175_v48 = vmul.f32 %v1052_v16, %v934_v13  ;;  %v1177_v49 = vmul.f32 %v1147_v25, %v936_v33 }
 0x5dc   :  { %v1056_v37 = vpop.f32.mrb[32].mxu0  ;;  %v1151_v38 = vpop.f32.mrb[22].mxu1 }
 0x5dd   :  { %v1178_v43 = vmul.f32 %v1056_v37, %v937_v14  ;;  %v3480_v44 = vmul.f32 %v1151_v38, %v939_v15  ;;  %v1058_v45 = vpop.f32.mrb[33].mxu0  ;;  %v1153_v46 = vpop.f32.mrb[23].mxu1  ;;  %v950_v15 = vsel %vm930_vm3, 1.0, %v2639_v21  ;;  %v949_v37 = vsel %vm929_vm11, 1.0, %v2639_v21 }
 0x5de   :  { %v1179_v50 = vmul.f32 %v1058_v45, %v938_v34  ;;  %v1181_v51 = vmul.f32 %v1153_v46, %v940_v35  ;;  %v1651_v45 = vld [vmem:[%s3928_s10 + $0x8] sm:$0xff]  ;;  %v1668_v46 = vld [vmem:[%s3928_s10 + $0x90] sm:$0xff]  ;;  %vm1865_vm3 = vcmask 261120   ;;  %vm1949_vm11 = vcmask 1024  }
 0x5df   :  { %v2411_v53 = vpack.c.bf16 %v1178_v43, %v1174_v41  ;;  %v2419_v54 = vpack.c.bf16 %v3480_v44, %v3478_v42  ;;  %v1666_v41 = vld [vmem:[%s3928_s10 + $0x80] sm:$0xff]  ;;  %v1667_v42 = vld [vmem:[%s3928_s10 + $0x88] sm:$0xff] }
 0x5e0   :  { %v2409_v56 = vpack.c.bf16 %v1179_v50, %v1175_v48  ;;  %v2417_v57 = vpack.c.bf16 %v1181_v51, %v1177_v49  ;;  %v1062_v58 = vpop.f32.mrb[34].mxu0  ;;  %v1157_v59 = vpop.f32.mrb[24].mxu1  ;;  %v1650_v43 = vld [vmem:[%s3928_s10] sm:$0xff]  ;;  %v2553_v44 = vpack.c.bf16 %v1667_v42, %v1666_v41  ;;  %v2557_v49 = vpack.c.bf16 %v1669_v47, %v1668_v46  ;;  %v1652_v50 = vld [vmem:[%s3928_s10 + $0x10] sm:$0xff]  ;;  %v1653_v51 = vld [vmem:[%s3928_s10 + $0x18] sm:$0xff] }
 0x5e1   :  { %v1064_v61 = vpop.f32.mrb[35].mxu0  ;;  %v1159_v62 = vpop.f32.mrb[25].mxu1  ;;  %v1182_v20 = vmul.f32 %v1062_v58, %v941_v2  ;;  %v1184_v22 = vmul.f32 %v1157_v59, %v943_v3  ;;  %v2555_v48 = vpack.c.bf16 %v1651_v45, %v1650_v43  ;;  %v1672_v58 = vld [vmem:[%s3928_s10 + $0xb0] sm:$0xff]  ;;  %v1673_v59 = vld [vmem:[%s3928_s10 + $0xb8] sm:$0xff] }
 0x5e2   :  { %2410 = vmatprep.subr.bf16.mxu0 %v2409_v56  ;;  %v1183_v26 = vmul.f32 %v1064_v61, %v942_v6  ;;  %v1185_v27 = vmul.f32 %v1159_v62, %v944_v5  ;;  %v1654_v56 = vld [vmem:[%s3928_s10 + $0x20] sm:$0xff]  ;;  %v2565_v62 = vpack.c.bf16 %v1673_v59, %v1672_v58  ;;  %v1656_v2 = vld [vmem:[%s3928_s10 + $0x30] sm:$0xff]  ;;  %v1657_v3 = vld [vmem:[%s3928_s10 + $0x38] sm:$0xff] }
 0x5e3   :  { %2412 = vmatpush1.bf16.msra.mxu0 %v2411_v53  ;;  %v1671_v53 = vld [vmem:[%s3928_s10 + $0xa8] sm:$0xff]  ;;  %v2567_v6 = vpack.c.bf16 %v1657_v3, %v1656_v2  ;;  %v1440_v41 = vld [vmem:[%s3927_s8 + $0x270] sm:$0xff]  ;;  %v1445_v45 = vld [vmem:[%s3927_s8 + $0x298] sm:$0xff] }
 0x5e4   :  { %v1068_v30 = vpop.f32.mrb[36].mxu0  ;;  %v1163_v12 = vpop.f32.mrb[26].mxu1  ;;  %v2561_v55 = vpack.c.bf16 %v1671_v53, %v1670_v52  ;;  %v1446_v59 = vld [vmem:[%s3927_s8 + $0x2a0] sm:$0xff]  ;;  %v1453_v2 = vld [vmem:[%s3927_s8 + $0x2d8] sm:$0xff] }
 0x5e5   :  { %v1186_v23 = vmul.f32 %v1068_v30, %v945_v9  ;;  %v1188_v24 = vmul.f32 %v1163_v12, %v947_v4  ;;  %v1070_v16 = vpop.f32.mrb[37].mxu0  ;;  %v1165_v25 = vpop.f32.mrb[27].mxu1  ;;  %v1674_v9 = vld [vmem:[%s3928_s10 + $0xc0] sm:$0xff]  ;;  %v1675_v4 = vld [vmem:[%s3928_s10 + $0xc8] sm:$0xff]  ;;  %v1676_v30 = vld [vmem:[%s3928_s10 + $0xd0] sm:$0xff] }
 0x5e6   :  { %v1187_v29 = vmul.f32 %v1070_v16, %v946_v10  ;;  %v1189_v31 = vmul.f32 %v1165_v25, %v948_v11  ;;  %v2569_v5 = vpack.c.bf16 %v1675_v4, %v1674_v9  ;;  %v1658_v10 = vld [vmem:[%s3928_s10 + $0x40] sm:$0xff]  ;;  %v1659_v11 = vld [vmem:[%s3928_s10 + $0x48] sm:$0xff]  ;;  %v1677_v12 = vld [vmem:[%s3928_s10 + $0xd8] sm:$0xff] }
 0x5e7   :  { %v2415_v13 = vpack.c.bf16 %v1186_v23, %v1182_v20  ;;  %v2423_v14 = vpack.c.bf16 %v1188_v24, %v1184_v22  ;;  %v2571_v20 = vpack.c.bf16 %v1659_v11, %v1658_v10  ;;  %v2573_v22 = vpack.c.bf16 %v1677_v12, %v1676_v30  ;;  %v1660_v23 = vld [vmem:[%s3928_s10 + $0x50] sm:$0xff]  ;;  %v1661_v24 = vld [vmem:[%s3928_s10 + $0x58] sm:$0xff]  ;;  %v1426_v25 = vld [vmem:[%s3927_s8 + $0x200] sm:$0xff] }
 0x5e8   :  { %v2413_v32 = vpack.c.bf16 %v1187_v29, %v1183_v26  ;;  %v2421_v63 = vpack.c.bf16 %v1189_v31, %v1185_v27  ;;  %v1074_v33 = vpop.f32.mrb[38].mxu0  ;;  %v1169_v34 = vpop.f32.mrb[28].mxu1  ;;  %v2575_v16 = vpack.c.bf16 %v1661_v24, %v1660_v23  ;;  %v1428_v26 = vld [vmem:[%s3927_s8 + $0x210] sm:$0xff]  ;;  %v1431_v27 = vld [vmem:[%s3927_s8 + $0x228] sm:$0xff]  ;;  %v1433_v29 = vld [vmem:[%s3927_s8 + $0x238] sm:$0xff] }
 0x5e9   :  { %v1076_v35 = vpop.f32.mrb[39].mxu0  ;;  %v1171_v36 = vpop.f32.mrb[29].mxu1  ;;  %v1190_v19 = vmul.f32 %v1074_v33, %v949_v37  ;;  %v1192_v0 = vmul.f32 %v1169_v34, %v951_v8  ;;  %v2642_v34 = vmov 1983009808   ;;  %v1437_v37 = vld [vmem:[%s3927_s8 + $0x258] sm:$0xff]  ;;  %v1450_v4 = vld [vmem:[%s3927_s8 + $0x2c0] sm:$0xff] }
 0x5ea   :  { %v1191_v38 = vmul.f32 %v1076_v35, %v950_v15  ;;  %2414 = vmatprep.subr.bf16.mxu0 %v2413_v32  ;;  %v1193_v28 = vmul.f32 %v1171_v36, %v952_v7  ;;  %v2493_v15 = vpack.c.bf16 %v1433_v29, %v1431_v27  ;;  %v1430_v32 = vld [vmem:[%s3927_s8 + $0x220] sm:$0xff]  ;;  %v1346_v35 = vunpack.c.l.s4 %v2642_v34  ;;  %v1435_v36 = vld [vmem:[%s3927_s8 + $0x248] sm:$0xff]  ;;  %v1436_v7 = vld [vmem:[%s3927_s8 + $0x250] sm:$0xff] }
 0x5eb   :  { %2416 = vmatpush1.bf16.msra.mxu0 %v2415_v13  ;;  %v2491_v13 = vpack.c.bf16 %v1428_v26, %v1426_v25  ;;  %v1457_v10 = vld [vmem:[%s3927_s8 + $0x2f8] sm:$0xff]  ;;  %v1454_v12 = vld [vmem:[%s3927_s8 + $0x2e0] sm:$0xff]  ;;  %v1460_v26 = vld [vmem:[%s3927_s8 + $0x310] sm:$0xff] }
 0x5ec   :  { %1205 = vmatprep.subr.mxu0 %v1191_v38  ;;  %v1347_v8 = vunpack.c.0.s8 %v1346_v35  ;;  %v1461_v23 = vld [vmem:[%s3927_s8 + $0x318] sm:$0xff]  ;;  %v1458_v25 = vld [vmem:[%s3927_s8 + $0x300] sm:$0xff]  ;;  %v1463_v27 = vld [vmem:[%s3927_s8 + $0x328] sm:$0xff] }
 0x5ed   :  { %v1465_v29 = vld [vmem:[%s3927_s8 + $0x338] sm:$0xff]  ;;  %v1466_v35 = vld [vmem:[%s3927_s8 + $0x340] sm:$0xff] }
 0x5ee   :  { %v1350_v42 = vsub.s32 %v1347_v8, %v3023_v60  ;;  %v1472_v8 = vld [vmem:[%s3927_s8 + $0x370] sm:$0xff] }
 0x5ef   :  { %1206 = vmatpush1.msra.mxu0 %v1190_v19  ;;  %v2497_v19 = vpack.c.bf16 %v1437_v37, %v1435_v36  ;;  %v1468_v36 = vld [vmem:[%s3927_s8 + $0x350] sm:$0xff]  ;;  %v1471_v37 = vld [vmem:[%s3927_s8 + $0x368] sm:$0xff] }
 0x5f0   :  { %2019 = vmatmul.mubr.msk.f32.vlgmr.msra.gmra.mrb[40].mxu0 %vm3983_vm9, %v954_v39  ;;  %2418 = vmatprep.subr.bf16.mxu0 %v2417_v57  ;;  %v1655_v57 = vld [vmem:[%s3928_s10 + $0x28] sm:$0xff] }
 0x5f1   :  { %2420 = vmatpush1.bf16.msra.mxu0 %v2419_v54  ;;  %1332 = vmatprep.mubr.f32.mxu0 %v2639_v21  ;;  %v2559_v54 = vpack.c.bf16 %v1653_v51, %v1652_v50  ;;  %v2563_v61 = vpack.c.bf16 %v1655_v57, %v1654_v56  ;;  %v1442_v50 = vld [vmem:[%s3927_s8 + $0x280] sm:$0xff]  ;;  %v1444_v51 = vld [vmem:[%s3927_s8 + $0x290] sm:$0xff] }
 0x5f2   :  { %2422 = vmatprep.subr.bf16.mxu0 %v2421_v63  ;;  %v1432_v63 = vld [vmem:[%s3927_s8 + $0x230] sm:$0xff]  ;;  %v2507_v57 = vpack.c.bf16 %v1444_v51, %v1442_v50  ;;  %v1485_v50 = vld [vmem:[%s3927_s8 + $0x3d8] sm:$0xff] }
 0x5f3   :  { %v2495_v38 = vpack.c.bf16 %v1432_v63, %v1430_v32  ;;  %v1467_v32 = vld [vmem:[%s3927_s8 + $0x348] sm:$0xff]  ;;  %v1469_v63 = vld [vmem:[%s3927_s8 + $0x358] sm:$0xff] }
 0x5f4   :  { %v2529_v34 = vpack.c.bf16 %v1469_v63, %v1467_v32 }
 0x5f5   :  { %2424 = vmatpush1.bf16.msra.mxu0 %v2423_v14 }
 0x5f6   :  { %1276 = vmatprep.subr.mxu0 %v1193_v28  ;;  %v1439_v28 = vld [vmem:[%s3927_s8 + $0x268] sm:$0xff] }
 0x5f9   :  { %1277 = vmatpush1.msra.mxu0 %v1192_v0  ;;  %v1441_v0 = vld [vmem:[%s3927_s8 + $0x278] sm:$0xff] }
 0x5fa   :  { %2020 = vmatmul.mubr.msk.f32.vlgmr.msra.gmra.mrb[42].mxu0 %vm3984_vm15, %v954_v39  ;;  %2554 = vmatprep.subr.bf16.mxu0 %v2553_v44  ;;  %v1434_v39 = vld [vmem:[%s3927_s8 + $0x240] sm:$0xff]  ;;  %v2501_v18 = vpack.c.bf16 %v1441_v0, %v1439_v28  ;;  %v1443_v44 = vld [vmem:[%s3927_s8 + $0x288] sm:$0xff]  ;;  %v1477_v0 = vld [vmem:[%s3927_s8 + $0x398] sm:$0xff] }
 0x5fb   :  { %2556 = vmatpush3.bf16.msra.mxu0 %v2555_v48  ;;  %v2499_v1 = vpack.c.bf16 %v1436_v7, %v1434_v39  ;;  %v2503_v48 = vpack.c.bf16 %v1440_v41, %v1438_v40  ;;  %v1470_v7 = vld [vmem:[%s3927_s8 + $0x360] sm:$0xff]  ;;  %v1475_v28 = vld [vmem:[%s3927_s8 + $0x388] sm:$0xff]  ;;  %v1476_v41 = vld [vmem:[%s3927_s8 + $0x390] sm:$0xff] }
 0x5fc   :  { %2558 = vmatprep.subr.bf16.mxu0 %v2557_v49  ;;  %v2505_v49 = vpack.c.bf16 %v1445_v45, %v1443_v44  ;;  %v1474_v40 = vld [vmem:[%s3927_s8 + $0x380] sm:$0xff]  ;;  %v1481_v44 = vld [vmem:[%s3927_s8 + $0x3b8] sm:$0xff] }
 0x5fd   :  { %v2539_v45 = vpack.c.bf16 %v1476_v41, %v1474_v40  ;;  %v1854_v40 = vld [vmem:[%s3933_s14] sm:$0xff]  ;;  %v1855_v41 = vld [vmem:[%s3933_s14 + $0x8] sm:$0xff] }
 0x5ff   :  { %2560 = vmatpush3.bf16.msra.mxu0 %v2559_v54  ;;  %v1447_v54 = vld [vmem:[%s3927_s8 + $0x2a8] sm:$0xff] }
 0x600   :  { %2562 = vmatprep.subr.bf16.mxu0 %v2561_v55  ;;  %v1449_v55 = vld [vmem:[%s3927_s8 + $0x2b8] sm:$0xff] }
 0x601   :  { %v2509_v58 = vpack.c.bf16 %v1449_v55, %v1447_v54  ;;  %v1484_v54 = vld [vmem:[%s3927_s8 + $0x3d0] sm:$0xff]  ;;  %v1487_v55 = vld [vmem:[%s3927_s8 + $0x3e8] sm:$0xff] }
 0x603   :  { %2564 = vmatpush3.bf16.msra.mxu0 %v2563_v61  ;;  %v1448_v61 = vld [vmem:[%s3927_s8 + $0x2b0] sm:$0xff] }
 0x604   :  { %2566 = vmatprep.subr.bf16.mxu0 %v2565_v62  ;;  %v1451_v62 = vld [vmem:[%s3927_s8 + $0x2c8] sm:$0xff]  ;;  %v2511_v3 = vpack.c.bf16 %v1448_v61, %v1446_v59  ;;  %v1486_v59 = vld [vmem:[%s3927_s8 + $0x3e0] sm:$0xff]  ;;  %v1488_v61 = vld [vmem:[%s3927_s8 + $0x3f0] sm:$0xff] }
 0x605   :  { %v2513_v9 = vpack.c.bf16 %v1453_v2, %v1451_v62  ;;  %v2551_v62 = vpack.c.bf16 %v1488_v61, %v1486_v59  ;;  %v1678_v2 = vld [vmem:[%s3928_s10 + $0xe0] sm:$0xff] }
 0x607   :  { %2568 = vmatpush3.bf16.msra.mxu0 %v2567_v6  ;;  %v1452_v6 = vld [vmem:[%s3927_s8 + $0x2d0] sm:$0xff] }
 0x608   :  { %2570 = vmatprep.subr.bf16.mxu0 %v2569_v5  ;;  %v1455_v5 = vld [vmem:[%s3927_s8 + $0x2e8] sm:$0xff]  ;;  %v2515_v11 = vpack.c.bf16 %v1452_v6, %v1450_v4  ;;  %v1662_v4 = vld [vmem:[%s3928_s10 + $0x60] sm:$0xff] }
 0x609   :  { %v2517_v30 = vpack.c.bf16 %v1457_v10, %v1455_v5  ;;  %v1663_v6 = vld [vmem:[%s3928_s10 + $0x68] sm:$0xff]  ;;  %v1681_v10 = vld [vmem:[%s3928_s10 + $0xf8] sm:$0xff] }
 0x60a   :  { %v2579_v5 = vpack.c.bf16 %v1663_v6, %v1662_v4 }
 0x60b   :  { %2572 = vmatpush3.bf16.msra.mxu0 %v2571_v20  ;;  %v1456_v20 = vld [vmem:[%s3927_s8 + $0x2f0] sm:$0xff] }
 0x60c   :  { %2574 = vmatprep.subr.bf16.mxu0 %v2573_v22  ;;  %v1459_v22 = vld [vmem:[%s3927_s8 + $0x308] sm:$0xff]  ;;  %v2519_v24 = vpack.c.bf16 %v1456_v20, %v1454_v12  ;;  %v1665_v12 = vld [vmem:[%s3928_s10 + $0x78] sm:$0xff] }
 0x60f   :  { %2576 = vmatpush3.bf16.msra.mxu0 %v2575_v16  ;;  %v2521_v16 = vpack.c.bf16 %v1461_v23, %v1459_v22  ;;  %v1494_v22 = vsub.s32 0, %v3023_v60  ;;  %v1490_v23 = vld [vmem:[%s3930_s9] sm:$0x3] }
 0x6c3   :  { %v1263_v31 = vpop.f32.mrb[40].mxu0 }
 0x6c4   :  { %v1265_v14 = vpop.f32.mrb[41].mxu0 }
 0x6c5   :  { %v1343_v33 = vcombine.low %v1263_v31, %v1265_v14  ;;  %1566 = vmatprep.mubr.f32.mxu1 %v1265_v14  ;;  %v1462_v14 = vld [vmem:[%s3927_s8 + $0x320] sm:$0xff] }
 0x6c6   :  { %1567 = vmatmul.mubr.f32.vlgmr.msra.gmra.mrb[30].mxu1 %v1263_v31  ;;  %v2523_v31 = vpack.c.bf16 %v1460_v26, %v1458_v25 }
 0x6c7   :  { %2492 = vmatpush1.bf16.msra.mxu1 %v2491_v13  ;;  %v1351_v52 = vrot.slane %v1343_v33, %v1350_v42  ;;  %v2525_v13 = vpack.c.bf16 %v1465_v29, %v1463_v27 }
 0x6c8   :  { %2494 = vmatprep.subr.bf16.mxu1 %v2493_v15  ;;  %v1464_v15 = vld [vmem:[%s3927_s8 + $0x330] sm:$0xff] }
 0x6c9   :  { %v2527_v33 = vpack.c.bf16 %v1464_v15, %v1462_v14  ;;  %v1763_v14 = vld [vmem:[%s3931_s12 + $0x8] sm:$0xff] }
 0x6cb   :  { %2496 = vmatpush1.bf16.msra.mxu1 %v2495_v38  ;;  %v1473_v38 = vld [vmem:[%s3927_s8 + $0x378] sm:$0xff] }
 0x6cc   :  { %2498 = vmatprep.subr.bf16.mxu1 %v2497_v19  ;;  %v2531_v19 = vpack.c.bf16 %v1468_v36, %v1466_v35  ;;  %v2533_v39 = vpack.c.bf16 %v1473_v38, %v1471_v37  ;;  %v1766_v37 = vld [vmem:[%s3931_s12 + $0x20] sm:$0xff]  ;;  %v1767_v38 = vld [vmem:[%s3931_s12 + $0x28] sm:$0xff] }
 0x6cd   :  { %v3681_v43 = vpop.f32.mrb[42].mxu0 }
 0x6ce   :  { %v1336_v46 = vpop.f32.mrb[43].mxu0 }
 0x6cf   :  { %v1344_v47 = vcombine.low %v3681_v43, %v1336_v46  ;;  %2500 = vmatpush1.bf16.msra.mxu1 %v2499_v1  ;;  %1637 = vmatprep.mubr.f32.mxu1 %v1336_v46  ;;  %v2535_v1 = vpack.c.bf16 %v1472_v8, %v1470_v7  ;;  %v1769_v7 = vld [vmem:[%s3931_s12 + $0x38] sm:$0xff] }
 0x6d0   :  { %2502 = vmatprep.subr.bf16.mxu1 %v2501_v18  ;;  %v2537_v18 = vpack.c.bf16 %v1477_v0, %v1475_v28  ;;  %v2021_v0 = vld [vmem:[%s3932_s11] ss:$0 sm:$0xff] }
 0x6d1   :  { %v1358_v53 = vrot.slane %v1344_v47, %v1350_v42  ;;  %v1479_v42 = vld [vmem:[%s3927_s8 + $0x3a8] sm:$0xff]  ;;  %v1478_v47 = vld [vmem:[%s3927_s8 + $0x3a0] sm:$0xff] }
 0x6d2   :  { %v2541_v46 = vpack.c.bf16 %v1481_v44, %v1479_v42 }
 0x6d3   :  { %v1359_v56 = vcombine.low %v1351_v52, %v1358_v53  ;;  %2504 = vmatpush1.bf16.msra.mxu1 %v2503_v48  ;;  %v1480_v48 = vld [vmem:[%s3927_s8 + $0x3b0] sm:$0xff]  ;;  %v1482_v53 = vld [vmem:[%s3927_s8 + $0x3c0] sm:$0xff] }
 0x6d4   :  { %2506 = vmatprep.subr.bf16.mxu1 %v2505_v49  ;;  %v1483_v49 = vld [vmem:[%s3927_s8 + $0x3c8] sm:$0xff]  ;;  %v2543_v51 = vpack.c.bf16 %v1480_v48, %v1478_v47  ;;  %v1856_v47 = vld [vmem:[%s3933_s14 + $0x10] sm:$0xff]  ;;  %v1857_v48 = vld [vmem:[%s3933_s14 + $0x18] sm:$0xff] }
 0x6d5   :  { %1361 = vst [vmem:[%s3929_s16] sm:$0xff] %v1359_v56  ;;  %v2545_v52 = vpack.c.bf16 %v1485_v50, %v1483_v49  ;;  %v1489_v56 = vld [vmem:[%s3927_s8 + $0x3f8] sm:$0xff]  ;;  %v2601_v49 = vpack.c.bf16 %v1857_v48, %v1856_v47  ;;  %v23_v50 = vstv %s3934_s15 }
 0x6d6   :  { %24 = vst [vmem:[#allocation2] sm:$0x1] %v23_v50 }
 0x6d7   :  { %2508 = vmatpush1.bf16.msra.mxu1 %v2507_v57  ;;  %v2547_v57 = vpack.c.bf16 %v1484_v54, %v1482_v53 }
 0x6d8   :  { %2510 = vmatprep.subr.bf16.mxu1 %v2509_v58  ;;  %v2549_v58 = vpack.c.bf16 %v1489_v56, %v1487_v55 }
 0x6db   :  { %2512 = vmatpush1.bf16.msra.mxu1 %v2511_v3  ;;  %v1679_v3 = vld [vmem:[%s3928_s10 + $0xe8] sm:$0xff] }
 0x6dc   :  { %2514 = vmatprep.subr.bf16.mxu1 %v2513_v9  ;;  %v2577_v9 = vpack.c.bf16 %v1679_v3, %v1678_v2 }
 0x6dd   :  { %v2024_v55 = vld [vmem:[#allocation2] ss:$0 sm:$0xff] }
 0x6de   :  { %2578 = vmatprep.subr.bf16.mxu0 %v2577_v9 }
 0x6df   :  { %2516 = vmatpush1.bf16.msra.mxu1 %v2515_v11  ;;  %2580 = vmatpush3.bf16.msra.mxu0 %v2579_v5 }
 0x6e0   :  { %2518 = vmatprep.subr.bf16.mxu1 %v2517_v30  ;;  %v1664_v30 = vld [vmem:[%s3928_s10 + $0x70] sm:$0xff] }
 0x6e1   :  { %v2583_v20 = vpack.c.bf16 %v1665_v12, %v1664_v30 }
 0x6e3   :  { %2520 = vmatpush1.bf16.msra.mxu1 %v2519_v24  ;;  %v1498_v24 = vsub.s32 1, %v3023_v60 }
 0x6e4   :  { %2522 = vmatprep.subr.bf16.mxu1 %v2521_v16  ;;  %v1495_v16 = vrot.slane %v1490_v23, %v1494_v22 }
 0x6e5   :  { %v1499_v25 = vrot.slane %v1490_v23, %v1498_v24 }
 0x6e7   :  { %2524 = vmatpush1.bf16.msra.mxu1 %v2523_v31 }
 0x6e8   :  { %2526 = vmatprep.subr.bf16.mxu1 %v2525_v13  ;;  %v1762_v13 = vld [vmem:[%s3931_s12] sm:$0xff] }
 0x6e9   :  { %v2586_v63 = vpack.c.bf16 %v1763_v14, %v1762_v13 }
 0x6eb   :  { %2528 = vmatpush1.bf16.msra.mxu1 %v2527_v33  ;;  %v1764_v33 = vld [vmem:[%s3931_s12 + $0x10] sm:$0xff] }
 0x6ec   :  { %2530 = vmatprep.subr.bf16.mxu1 %v2529_v34  ;;  %v1765_v34 = vld [vmem:[%s3931_s12 + $0x18] sm:$0xff] }
 0x6ed   :  { %v2589_v36 = vpack.c.bf16 %v1765_v34, %v1764_v33 }
 0x6ef   :  { %2532 = vmatpush1.bf16.msra.mxu1 %v2531_v19  ;;  %v2592_v19 = vpack.c.bf16 %v1767_v38, %v1766_v37 }
 0x6f0   :  { %2534 = vmatprep.subr.bf16.mxu1 %v2533_v39  ;;  %v1768_v39 = vld [vmem:[%s3931_s12 + $0x30] sm:$0xff] }
 0x6f1   :  { %v2595_v8 = vpack.c.bf16 %v1769_v7, %v1768_v39 }
 0x6f3   :  { %2536 = vmatpush1.bf16.msra.mxu1 %v2535_v1 }
 0x6f4   :  { %2538 = vmatprep.subr.bf16.mxu1 %v2537_v18 }
 0x6f7   :  { %2540 = vmatpush1.bf16.msra.mxu1 %v2539_v45  ;;  %v2598_v45 = vpack.c.bf16 %v1855_v41, %v1854_v40 }
 0x6f8   :  { %2542 = vmatprep.subr.bf16.mxu1 %v2541_v46 }
 0x6fb   :  { %2544 = vmatpush1.bf16.msra.mxu1 %v2543_v51 }
 0x6fc   :  { %2546 = vmatprep.subr.bf16.mxu1 %v2545_v52 }
 0x6ff   :  { %2548 = vmatpush1.bf16.msra.mxu1 %v2547_v57 }
 0x700   :  { %2550 = vmatprep.subr.bf16.mxu1 %v2549_v58 }
 0x703   :  { %2552 = vmatpush1.bf16.msra.mxu1 %v2551_v62 }
 0x706   :  { %1638 = vmatmul.mubr.f32.vlgmr.msra.gmra.mrb[30].mxu1 %v3681_v43  ;;  %v1680_v43 = vld [vmem:[%s3928_s10 + $0xf0] sm:$0xff] }
 0x707   :  { %v2581_v11 = vpack.c.bf16 %v1681_v10, %v1680_v43 }
 0x709   :  { %2582 = vmatprep.subr.bf16.mxu0 %v2581_v11 }
 0x70a   :  { %2584 = vmatpush3.bf16.msra.mxu0 %v2583_v20 }
 0x70b   :  { %2585 = vmatprep.subr.bf16.mxu0 %v2637_v17 }
 0x7d9   :  { %v1639_v26 = vpop.f32.mrb[30].mxu1 }
 0x7da   :  { %v2603_v27 = vadd.f32 %v1639_v26, %v1495_v16  ;;  %v1641_v29 = vpop.f32.mrb[31].mxu1 }
 0x7db   :  { %v2604_v31 = vadd.f32 %v1641_v29, %v1499_v25 }
 0x7dc   :  { %v1646_v15 = vmul.f32 0.01, %v2603_v27  ;;  %vm1644_vm12 = vcmp.ge.f32.partialorder %v2603_v27, 0.0 }
 0x7dd   :  { %v1647_v32 = vmul.f32 0.01, %v2604_v31  ;;  %vm1645_vm5 = vcmp.ge.f32.partialorder %v2604_v31, 0.0 }
 0x7de   :  { %v1648_v35 = vsel %vm1644_vm12, %v2603_v27, %v1646_v15 }
 0x7df   :  { %v1649_v60 = vsel %vm1645_vm5, %v2604_v31, %v1647_v32 }
 0x7e0   :  { %1753 = vmatprep.mubr.f32.mxu0 %v1649_v60 }
 0x7e1   :  { %1754 = vmatmul.mubr.f32.vlgmr.msra.gmra.mrb[44].mxu0 %v1648_v35 }
 0x7e2   :  { %2587 = vmatpush3.bf16.msra.mxu0 %v2586_v63  ;;  %2312 = vmatprep.mubr.msk.f32.mxu0 %vm3985_vm4, %v2639_v21 }
 0x7e3   :  { %2588 = vmatprep.subr.bf16.mxu0 %v2637_v17 }
 0x7e6   :  { %2590 = vmatpush3.bf16.msra.mxu0 %v2589_v36 }
 0x7e7   :  { %2591 = vmatprep.subr.bf16.mxu0 %v2637_v17 }
 0x7ea   :  { %2593 = vmatpush3.bf16.msra.mxu0 %v2592_v19 }
 0x7eb   :  { %2594 = vmatprep.subr.bf16.mxu0 %v2637_v17 }
 0x7ee   :  { %2596 = vmatpush3.bf16.msra.mxu0 %v2595_v8 }
 0x7ef   :  { %2597 = vmatprep.subr.bf16.mxu0 %v2637_v17 }
 0x8b4   :  { %v2163_v28 = vpop.f32.mrb[44].mxu0 }
 0x8b5   :  { %v2164_v1 = vpop.f32.mrb[45].mxu0 }
 0x8b6   :  { %v2165_v18 = vadd.f32 %v2164_v1, %v2163_v28 }
 0x8b8   :  { %v1756_v42 = vadd.f32 %v2165_v18, %v2021_v0 }
 0x8ba   :  { %vm1759_vm1 = vcmp.ge.f32.partialorder %v1756_v42, 0.0  ;;  %v1760_v44 = vmul.f32 0.01, %v1756_v42 }
 0x8bc   :  { %v1761_v46 = vsel %vm1759_vm1, %v1756_v42, %v1760_v44 }
 0x8bd   :  { %2313 = vmatmul.mubr.msk.f32.vlgmr.msra.gmra.mrb[46].mxu0 %vm1777_vm2, %v1761_v46 }
 0x8be   :  { %2599 = vmatpush3.bf16.msra.mxu0 %v2598_v45  ;;  %2323 = vmatprep.mubr.msk.f32.mxu0 %vm3985_vm4, %v2639_v21  ;;  %v2022_v21 = vld [vmem:[%s3935_s13] ss:$0 sm:$0xff] }
 0x8bf   :  { %2600 = vmatprep.subr.bf16.mxu0 %v2637_v17 }
 0x8c2   :  { %2602 = vmatpush3.bf16.msra.mxu0 %v2601_v49 }
 0x990   :  { %v1847_v17 = vpop.f32.mrb[46].mxu0 }
 0x991   :  { %v1848_v51 = vadd.f32 %v2022_v21, %v1847_v17  ;;  %v2314_v52 = vpop.f32.mrb[47].mxu0 }
 0x993   :  { %vm1851_vm8 = vcmp.ge.f32.partialorder %v1848_v51, 0.0  ;;  %v1852_v53 = vmul.f32 0.01, %v1848_v51 }
 0x995   :  { %v1853_v54 = vsel %vm1851_vm8, %v1848_v51, %v1852_v53 }
 0x996   :  { %2324 = vmatmul.mubr.msk.f32.vlgmr.msra.gmra.mrb[48].mxu0 %vm1865_vm3, %v1853_v54 }
 0xa69   :  { %v1935_v56 = vpop.f32.mrb[48].mxu0 }
 0xa6a   :  { %v1936_v57 = vadd.f32 %v2024_v55, %v1935_v56  ;;  %v2325_v58 = vpop.f32.mrb[49].mxu0 }
 0xa6c   :  { %v1939_v59 = vand.u32 2147483647, %v1936_v57  ;;  %vm1943_vm7 = vcmp.ge.f32.partialorder %v1936_v57, 0.0 }
 0xa6e   :  { %v1940_v61 = vsub.f32 0.0, %v1939_v59 }
 0xa70   :  { %v1941_v62 = vmul.f32 1.442695, %v1940_v61 }
 0xa72   :  { %2633 = vpow2.f32 %v1941_v62 }
 0xa7c   :  { %v2634_v2 = vpop.eup %2633 }
 0xa7d   :  { %v1944_v3 = vadd.f32 1.0, %v2634_v2 }
 0xa7f   :  { %2635 = vrcp.f32 %v1944_v3 }
 0xa89   :  { %v2636_v9 = vpop.eup %2635 }
 0xa8a   :  { %v1947_v4 = vmul.f32 %v2636_v9, %v2634_v2 }
 0xa8c   :  { %v1948_v6 = vsel %vm1943_vm7, %v2636_v9, %v1947_v4 }
 0xa8d   :  { %1950 = vst.msk [vmem:[%s3936_s17] sm:$0x3] %vm1949_vm11, %v1948_v6 }

</bundles_post_ra>
